<compile_context>
chip_gen: v7x
topology: tpu7x:2x2x1
jax: 0.10.0
libtpu: 0.0.40
codegen_flags: <defaults>
</compile_context>

<pallas_src>
import functools

import numpy as np
import jax
import jax.numpy as jnp
from jax.experimental import pallas as pl
from jax.experimental.pallas import tpu as pltpu

EPS = 1e-5  # BatchNorm2d default eps
VMEM_LIMIT = 32 * 1024 * 1024


def _round_up(x, m):
    return ((x + m - 1) // m) * m


def _pick_band(H, wp2, cout, max_bytes=96 * 1024):
    """Row-band height tb: divides H, prefers >=2 bands (v7x megacore), bounded acc tile."""
    divisors = [tb for tb in range(1, H + 1) if H % tb == 0]
    two_plus = [tb for tb in divisors if H // tb >= 2] or divisors
    fits = [tb for tb in two_plus if tb * wp2 * cout * 4 <= max_bytes] or [two_plus[0]]
    return max(fits)


# ----------------------------------------------------------------------------
# Conv3x3(pad=1) + BN(eval) + ReLU : 3 aligned slabs, 3 MXU dots (K = 3*Cin)
# ----------------------------------------------------------------------------
def _conv_band(xk_ref, w_ref, shift_ref, wp2, tbw):
    """Conv + BN-shift + ReLU for one row-band; returns (tbw, Cout) f32."""
    base = pl.multiple_of(pl.program_id(1) * tbw, 16)
    acc = jnp.dot(xk_ref[pl.ds(base, tbw), :], w_ref[0],
                  preferred_element_type=jnp.float32)
    acc = acc + jnp.dot(xk_ref[pl.ds(base + wp2, tbw), :], w_ref[1],
                        preferred_element_type=jnp.float32)
    acc = acc + jnp.dot(xk_ref[pl.ds(base + 2 * wp2, tbw), :], w_ref[2],
                        preferred_element_type=jnp.float32)
    # TODO(synk): concatenate the 3 ky slabs along lanes (K = 9*Cin) for a single dot
    # once unaligned bf16 minor-dim concat is guaranteed by the Mosaic version in use.
    return jnp.maximum(acc + shift_ref[...], 0.0)


def _make_conv_kernel(wp2, tbw):
    def kernel(xk_ref, w_ref, shift_ref, o_ref):
        y = _conv_band(xk_ref, w_ref, shift_ref, wp2, tbw)
        o_ref[...] = y.astype(o_ref.dtype)
    return kernel


def _make_conv_gap_kernel(wp2, tbw, W, inv_hw):
    def kernel(xk_ref, w_ref, shift_ref, o_ref, acc_ref):
        r = pl.program_id(1)

        @pl.when(r == 0)
        def _():
            acc_ref[...] = jnp.zeros_like(acc_ref)

        y = _conv_band(xk_ref, w_ref, shift_ref, wp2, tbw)
        # Mask the (wp2 - W) garbage stride columns before the global-average-pool sum.
        col = jax.lax.broadcasted_iota(jnp.int32, (tbw, 1), 0) % wp2
        y = jnp.where(col < W, y, 0.0)
        acc_ref[...] += jnp.sum(y, axis=0, keepdims=True)

        @pl.when(r == pl.num_programs(1) - 1)
        def _():
            o_ref[...] = (acc_ref[...] * inv_hw).astype(o_ref.dtype)
    return kernel


def _prep_inputs(x, cp):
    """Pad + flatten + kx-expand activations; fold BN into weights/shift.

    x: (B, H, W, Cin) bf16
    -> xk    (B, (H+2)*wp2, 3*Cin) bf16   kx-expanded padded flat image
       wk    (3, 3*Cin, Cout)      bf16   per-ky weights, BN scale folded in
       shift (1, Cout)             f32    conv-bias/mean/beta folded shift
    """
    B, H, W, Cin = x.shape
    wp2 = _round_up(W + 2, 16)           # padded row stride, multiple of 16 (bf16 sublanes)
    Hp = H + 3                           # 1 top halo + 2 bottom slack rows
    xpad = jnp.pad(x, ((0, 0), (1, Hp - H - 1), (1, wp2 - W - 1), (0, 0)))
    xf = xpad.reshape(B, Hp * wp2, Cin)
    Pk = (H + 2) * wp2
    xk = jnp.concatenate([xf[:, s:s + Pk, :] for s in range(3)],
                         axis=-1).astype(jnp.bfloat16)

    w_pt = cp["w"]                                           # (Cout, Cin, 3, 3)
    Cout = w_pt.shape[0]
    scale = cp["gamma"] / jnp.sqrt(cp["var"] + EPS)          # (Cout,)
    shift = (cp["b"] - cp["mean"]) * scale + cp["beta"]      # (Cout,)
    wk = (jnp.transpose(w_pt, (2, 3, 1, 0)) * scale).reshape(3, 3 * Cin, Cout)
    wk = wk.astype(jnp.bfloat16)
    shift_p = shift.reshape(1, Cout).astype(jnp.float32)
    return xk, wk, shift_p, wp2, Pk, Cout


def conv3x3_bn_relu(x, cp):
    """x: (B, H, W, Cin) bf16 -> (B, H, W, Cout) bf16 (compact NHWC)."""
    B, H, W, Cin = x.shape
    xk, wk, shift_p, wp2, Pk, Cout = _prep_inputs(x, cp)
    tb = _pick_band(H, wp2, Cout)
    nb = H // tb
    tbw = tb * wp2

    out = pl.pallas_call(
        _make_conv_kernel(wp2, tbw),
        out_shape=jax.ShapeDtypeStruct((B, H * wp2, Cout), jnp.bfloat16),
        grid=(B, nb),
        in_specs=[
            pl.BlockSpec((None, Pk, 3 * Cin), lambda b, r: (b, 0, 0)),
            pl.BlockSpec((3, 3 * Cin, Cout), lambda b, r: (0, 0, 0)),
            pl.BlockSpec((1, Cout), lambda b, r: (0, 0)),
        ],
        out_specs=pl.BlockSpec((None, tbw, Cout), lambda b, r: (b, r, 0)),
        compiler_params=pltpu.CompilerParams(
            dimension_semantics=("parallel", "parallel"),
            vmem_limit_bytes=VMEM_LIMIT),
    )(xk, wk, shift_p)
    # Drop the garbage stride columns (bf16, compact channels -> cheap XLA slice).
    return out.reshape(B, H, wp2, Cout)[:, :, :W, :]


def conv3x3_bn_relu_gap(x, cp):
    """Final conv + BN + ReLU with fused global average pool: -> (B, Cout) f32."""
    B, H, W, Cin = x.shape
    xk, wk, shift_p, wp2, Pk, Cout = _prep_inputs(x, cp)
    tb = _pick_band(H, wp2, Cout)
    nb = H // tb
    tbw = tb * wp2

    out = pl.pallas_call(
        _make_conv_gap_kernel(wp2, tbw, W, 1.0 / float(H * W)),
        out_shape=jax.ShapeDtypeStruct((B, 1, Cout), jnp.float32),
        grid=(B, nb),
        in_specs=[
            pl.BlockSpec((None, Pk, 3 * Cin), lambda b, r: (b, 0, 0)),
            pl.BlockSpec((3, 3 * Cin, Cout), lambda b, r: (0, 0, 0)),
            pl.BlockSpec((1, Cout), lambda b, r: (0, 0)),
        ],
        out_specs=pl.BlockSpec((None, 1, Cout), lambda b, r: (b, 0, 0)),
        scratch_shapes=[pltpu.VMEM((1, Cout), jnp.float32)],
        compiler_params=pltpu.CompilerParams(
            dimension_semantics=("parallel", "arbitrary"),
            vmem_limit_bytes=VMEM_LIMIT),
    )(xk, wk, shift_p)
    return out.reshape(B, Cout)


def avg_pool2(x):
    """AvgPool2d(kernel=2, stride=2) — tiny XLA glue reduction."""
    B, H, W, C = x.shape
    return x.reshape(B, H // 2, 2, W // 2, 2, C).mean(axis=(2, 4))


# ----------------------------------------------------------------------------
# CNN-MoE head (gate softmax + experts + gated sum), single fused kernel
# ----------------------------------------------------------------------------
def _head_kernel(x_ref, w_ref, b_ref, out_ref, *, num_experts, num_classes):
    E, C = num_experts, num_classes
    x = x_ref[...]                                           # (B, 512) f32 GAP features
    # One fused matmul: columns = [gate | expert_0 | ... | expert_{E-1} | zero pad]
    h = jnp.dot(x, w_ref[...], preferred_element_type=jnp.float32) + b_ref[...]
    logits = h[:, :E]
    m = jnp.max(logits, axis=-1, keepdims=True)
    p = jnp.exp(logits - m)
    gate = p / jnp.sum(p, axis=-1, keepdims=True)            # exact softmax (review note)
    acc = jnp.zeros((x.shape[0], C), jnp.float32)
    for e in range(E):                                       # tiny static VPU-only loop
        he = jnp.maximum(h[:, E + e * C: E + (e + 1) * C], 0.0)
        acc = acc + gate[:, e:e + 1] * he
    out_ref[...] = acc.astype(out_ref.dtype)


def moe_head(feats, params):
    """feats: (B, 512) f32 -> moe_logits (B, num_classes) f32."""
    B, D = feats.shape
    gw, gb = params["gate_w"], params["gate_b"]              # (D, E), (1, E)
    ew, eb = params["expert_w"], params["expert_b"]          # (E, D, C), (E, 1, C)
    E, C = ew.shape[0], ew.shape[2]
    n = E + E * C
    npad = _round_up(n, 128)                                 # lane-dense fused head matmul
    head_w = jnp.concatenate(
        [gw, jnp.transpose(ew, (1, 0, 2)).reshape(D, E * C)], axis=1)
    head_w = jnp.pad(head_w, ((0, 0), (0, npad - n)))
    head_b = jnp.pad(jnp.concatenate([gb.reshape(-1), eb.reshape(-1)]),
                     (0, npad - n)).reshape(1, npad)
    return pl.pallas_call(
        functools.partial(_head_kernel, num_experts=E, num_classes=C),
        out_shape=jax.ShapeDtypeStruct((B, C), jnp.float32),
        grid=(1,),
        in_specs=[
            pl.BlockSpec((B, D), lambda i: (0, 0)),
            pl.BlockSpec((D, npad), lambda i: (0, 0)),
            pl.BlockSpec((1, npad), lambda i: (0, 0)),
        ],
        out_specs=pl.BlockSpec((B, C), lambda i: (0, 0)),
        compiler_params=pltpu.CompilerParams(dimension_semantics=("arbitrary",)),
    )(feats, head_w, head_b)


def cnn_moe_forward(x_nchw, params, pools):
    """Returns (dcnn_features (B, 512), moe_logits (B, num_classes))."""
    x = jnp.transpose(x_nchw, (0, 2, 3, 1)).astype(jnp.bfloat16)   # NCHW -> NHWC bf16
    convs = params["convs"]
    feats = None
    for i, (cp, do_pool) in enumerate(zip(convs, pools)):
        if i == len(convs) - 1:
            # GAP(avgpool2(y)) == GAP(y), so any trailing AvgPool is absorbed exactly
            # by the fused global average pool.
            feats = conv3x3_bn_relu_gap(x, cp)               # (B, 512) f32 == DCNN output
        else:
            x = conv3x3_bn_relu(x, cp)                       # compact NHWC bf16
            if do_pool:
                x = avg_pool2(x)
    logits = moe_head(feats, params)
    return feats, logits


# ----------------------------- parameter init -----------------------------
def init_params(key, cin, conv_channels, num_classes, num_experts):
    params = {"convs": []}
    for cout in conv_channels:
        key, kw = jax.random.split(key)
        # kaiming_normal_(mode='fan_out', nonlinearity='relu'): std = sqrt(2/(Cout*3*3))
        std = float(np.sqrt(2.0 / (cout * 3 * 3)))
        params["convs"].append(dict(
            w=jax.random.normal(kw, (cout, cin, 3, 3), jnp.float32) * std,
            b=jnp.zeros((cout,), jnp.float32),
            gamma=jnp.ones((cout,), jnp.float32),
            beta=jnp.zeros((cout,), jnp.float32),
            mean=jnp.zeros((cout,), jnp.float32),            # BN eval-mode running stats
            var=jnp.ones((cout,), jnp.float32),
        ))
        cin = cout
    key, kg, ke = jax.random.split(key, 3)
    params["gate_w"] = jax.random.normal(kg, (512, num_experts), jnp.float32) * 0.01
    params["gate_b"] = jnp.zeros((1, num_experts), jnp.float32)
    params["expert_w"] = jax.random.normal(ke, (num_experts, 512, num_classes), jnp.float32) * 0.01
    params["expert_b"] = jnp.zeros((num_experts, 1, num_classes), jnp.float32)
    return params


# ----------------------------- pure-JAX reference -----------------------------
def reference_forward(x_nchw, params, pools):
    hi = jax.lax.Precision.HIGHEST
    x = jnp.transpose(x_nchw, (0, 2, 3, 1))
    for cp, do_pool in zip(params["convs"], pools):
        w = jnp.transpose(cp["w"], (2, 3, 1, 0))             # HWIO
        y = jax.lax.conv_general_dilated(
            x, w, (1, 1), ((1, 1), (1, 1)),
            dimension_numbers=("NHWC", "HWIO", "NHWC"), precision=hi)
        y = y + cp["b"]
        y = (y - cp["mean"]) / jnp.sqrt(cp["var"] + EPS) * cp["gamma"] + cp["beta"]
        x = jnp.maximum(y, 0.0)
        if do_pool:
            x = avg_pool2(x)
    feat = x.mean(axis=(1, 2))                               # GAP -> (B, 512) == DCNN output
    gate = jax.nn.softmax(jnp.dot(feat, params["gate_w"], precision=hi) + params["gate_b"], axis=1)
    E = params["expert_w"].shape[0]
    experts = jnp.stack(
        [jnp.maximum(jnp.dot(feat, params["expert_w"][e], precision=hi) + params["expert_b"][e], 0.0)
         for e in range(E)], axis=1)                         # (B, E, C)
    logits = jnp.sum(gate[:, :, None] * experts, axis=1)
    return feat, logits


# ----------------------------- main -----------------------------
if __name__ == "__main__":
    key = jax.random.PRNGKey(0)
    k_x, k_p = jax.random.split(key)

    B, Cin, Hs, Ws = 2, 4, 16, 16
    num_classes, num_experts = 8, 4
    conv_channels = (32, 64, 512)     # VGG7-like feature stack; final dim must be 512
    pools = (True, True, False)       # spatial: 16 -> 8 -> 4 -> GAP

    x = jax.random.normal(k_x, (B, Cin, Hs, Ws), jnp.float32)
    params = init_params(k_p, Cin, conv_channels, num_classes, num_experts)

    fwd = jax.jit(lambda xx, pp: cnn_moe_forward(xx, pp, pools))
    feats, logits = jax.block_until_ready(fwd(x, params))

    ref_feats, ref_logits = reference_forward(x, params, pools)
    ref_feats = jax.block_until_ready(ref_feats)

    assert feats.shape == (B, 512)                # DCNN.forward output (GAP features)
    assert logits.shape == (B, num_classes)       # CNN-MoE head output

    # Tolerances sized for bf16 MXU operands / bf16 activations (f32 accumulation)
    # vs. an all-f32 reference.
    np.testing.assert_allclose(np.asarray(feats), np.asarray(ref_feats), rtol=2e-2, atol=1e-2)
    np.testing.assert_allclose(np.asarray(logits), np.asarray(ref_logits), rtol=2e-2, atol=5e-3)
    print("KERNEL_OK")
</pallas_src>

<mosaic_0001>
module attributes {stable_mosaic.version = 11 : i64} {
  func.func @kernel(%arg0: i32, %arg1: i32, %arg2: memref<1x576x12xbf16, #tpu.memory_space<vmem>>, %arg3: memref<3x12x32xbf16, #tpu.memory_space<vmem>>, %arg4: memref<1x32xf32, #tpu.memory_space<vmem>>, %arg5: memref<1x256x32xbf16, #tpu.memory_space<vmem>>) attributes {dimension_semantics = [#tpu.dimension_semantics<parallel>, #tpu.dimension_semantics<parallel>], iteration_bounds = array<i64: 2, 2>, scalar_prefetch = 0 : i64, scratch_operands = 0 : i64, tpu.core_type = #tpu.core_type<tc>, window_params = [{transform_indices = @transform_0, window_bounds = array<i64: 1, 576, 12>}, {pipeline_mode = #tpu.pipeline_mode<synchronous>, transform_indices = @transform_1, window_bounds = array<i64: 3, 12, 32>}, {pipeline_mode = #tpu.pipeline_mode<synchronous>, transform_indices = @transform_2, window_bounds = array<i64: 1, 32>}, {transform_indices = @transform_3, window_bounds = array<i64: 1, 256, 32>}]} {
    %c256_i32 = arith.constant 256 : i32
    %0 = arith.muli %arg1, %c256_i32 : i32
    %1 = tpu.assume_multiple %0, 16 : i32
    %c0 = arith.constant 0 : index
    %2 = arith.index_cast %1 : i32 to index
    %c0_0 = arith.constant 0 : index
    %3 = vector.load %arg2[%c0, %2, %c0_0] : memref<1x576x12xbf16, #tpu.memory_space<vmem>>, vector<1x256x12xbf16>
    %4 = vector.shape_cast %3 : vector<1x256x12xbf16> to vector<256x12xbf16>
    %c0_1 = arith.constant 0 : index
    %c0_2 = arith.constant 0 : index
    %c0_3 = arith.constant 0 : index
    %5 = vector.load %arg3[%c0_1, %c0_2, %c0_3] : memref<3x12x32xbf16, #tpu.memory_space<vmem>>, vector<1x12x32xbf16>
    %6 = vector.shape_cast %5 : vector<1x12x32xbf16> to vector<12x32xbf16>
    %cst = arith.constant dense<0.000000e+00> : vector<256x32xf32>
    %7 = tpu.matmul %4, %6, %cst {dimension_numbers = #tpu.dot_dimension_numbers<[1], [0], [0], [1], [0, 0, 1, 1], [], []>} : vector<256x12xbf16>, vector<12x32xbf16>, vector<256x32xf32> -> vector<256x32xf32>
    %c32_i32 = arith.constant 32 : i32
    %8 = arith.addi %1, %c32_i32 : i32
    %c0_4 = arith.constant 0 : index
    %9 = arith.index_cast %8 : i32 to index
    %c0_5 = arith.constant 0 : index
    %10 = vector.load %arg2[%c0_4, %9, %c0_5] : memref<1x576x12xbf16, #tpu.memory_space<vmem>>, vector<1x256x12xbf16>
    %11 = vector.shape_cast %10 : vector<1x256x12xbf16> to vector<256x12xbf16>
    %c1 = arith.constant 1 : index
    %c0_6 = arith.constant 0 : index
    %c0_7 = arith.constant 0 : index
    %12 = vector.load %arg3[%c1, %c0_6, %c0_7] : memref<3x12x32xbf16, #tpu.memory_space<vmem>>, vector<1x12x32xbf16>
    %13 = vector.shape_cast %12 : vector<1x12x32xbf16> to vector<12x32xbf16>
    %cst_8 = arith.constant dense<0.000000e+00> : vector<256x32xf32>
    %14 = tpu.matmul %11, %13, %cst_8 {dimension_numbers = #tpu.dot_dimension_numbers<[1], [0], [0], [1], [0, 0, 1, 1], [], []>} : vector<256x12xbf16>, vector<12x32xbf16>, vector<256x32xf32> -> vector<256x32xf32>
    %15 = arith.addf %7, %14 : vector<256x32xf32>
    %c64_i32 = arith.constant 64 : i32
    %16 = arith.addi %1, %c64_i32 : i32
    %c0_9 = arith.constant 0 : index
    %17 = arith.index_cast %16 : i32 to index
    %c0_10 = arith.constant 0 : index
    %18 = vector.load %arg2[%c0_9, %17, %c0_10] : memref<1x576x12xbf16, #tpu.memory_space<vmem>>, vector<1x256x12xbf16>
    %19 = vector.shape_cast %18 : vector<1x256x12xbf16> to vector<256x12xbf16>
    %c2 = arith.constant 2 : index
    %c0_11 = arith.constant 0 : index
    %c0_12 = arith.constant 0 : index
    %20 = vector.load %arg3[%c2, %c0_11, %c0_12] : memref<3x12x32xbf16, #tpu.memory_space<vmem>>, vector<1x12x32xbf16>
    %21 = vector.shape_cast %20 : vector<1x12x32xbf16> to vector<12x32xbf16>
    %cst_13 = arith.constant dense<0.000000e+00> : vector<256x32xf32>
    %22 = tpu.matmul %19, %21, %cst_13 {dimension_numbers = #tpu.dot_dimension_numbers<[1], [0], [0], [1], [0, 0, 1, 1], [], []>} : vector<256x12xbf16>, vector<12x32xbf16>, vector<256x32xf32> -> vector<256x32xf32>
    %23 = arith.addf %15, %22 : vector<256x32xf32>
    %c0_14 = arith.constant 0 : index
    %c0_15 = arith.constant 0 : index
    %24 = vector.load %arg4[%c0_14, %c0_15] : memref<1x32xf32, #tpu.memory_space<vmem>>, vector<1x32xf32>
    %25 = vector.broadcast %24 : vector<1x32xf32> to vector<256x32xf32>
    %26 = arith.addf %23, %25 : vector<256x32xf32>
    %cst_16 = arith.constant 0.000000e+00 : f32
    %27 = vector.broadcast %cst_16 : f32 to vector<256x32xf32>
    %28 = arith.maximumf %26, %27 : vector<256x32xf32>
    %29 = arith.truncf %28 : vector<256x32xf32> to vector<256x32xbf16>
    %c0_17 = arith.constant 0 : index
    %c0_18 = arith.constant 0 : index
    %c0_19 = arith.constant 0 : index
    %30 = vector.load %arg5[%c0_17, %c0_18, %c0_19] : memref<1x256x32xbf16, #tpu.memory_space<vmem>>, vector<1x256x32xbf16>
    %31 = vector.shape_cast %30 : vector<1x256x32xbf16> to vector<256x32xbf16>
    %32 = vector.shape_cast %29 : vector<256x32xbf16> to vector<1x256x32xbf16>
    tpu.vector_store %arg5[%c0_17, %c0_18, %c0_19], %32 {strides = array<i32>} : memref<1x256x32xbf16, #tpu.memory_space<vmem>>, vector<1x256x32xbf16>,
    return
  }
  func.func @transform_0(%arg0: i32, %arg1: i32) -> (i32, i32, i32) {
    %c0_i32 = arith.constant 0 : i32
    %c0_i32_0 = arith.constant 0 : i32
    %c0_i32_1 = arith.constant 0 : i32
    return %arg0, %c0_i32, %c0_i32_0 : i32, i32, i32
  }
  func.func @transform_1(%arg0: i32, %arg1: i32) -> (i32, i32, i32) {
    %c0_i32 = arith.constant 0 : i32
    %c0_i32_0 = arith.constant 0 : i32
    %c0_i32_1 = arith.constant 0 : i32
    %c0_i32_2 = arith.constant 0 : i32
    return %c0_i32, %c0_i32_0, %c0_i32_1 : i32, i32, i32
  }
  func.func @transform_2(%arg0: i32, %arg1: i32) -> (i32, i32) {
    %c0_i32 = arith.constant 0 : i32
    %c0_i32_0 = arith.constant 0 : i32
    %c0_i32_1 = arith.constant 0 : i32
    return %c0_i32, %c0_i32_0 : i32, i32
  }
  func.func @transform_3(%arg0: i32, %arg1: i32) -> (i32, i32, i32) {
    %c0_i32 = arith.constant 0 : i32
    %c0_i32_0 = arith.constant 0 : i32
    return %arg0, %arg1, %c0_i32 : i32, i32, i32
  }
}

module attributes {stable_mosaic.version = 11 : i64} {
  func.func @kernel(%arg0: i32, %arg1: i32, %arg2: memref<1x160x96xbf16, #tpu.memory_space<vmem>>, %arg3: memref<3x96x64xbf16, #tpu.memory_space<vmem>>, %arg4: memref<1x64xf32, #tpu.memory_space<vmem>>, %arg5: memref<1x64x64xbf16, #tpu.memory_space<vmem>>) attributes {dimension_semantics = [#tpu.dimension_semantics<parallel>, #tpu.dimension_semantics<parallel>], iteration_bounds = array<i64: 2, 2>, scalar_prefetch = 0 : i64, scratch_operands = 0 : i64, tpu.core_type = #tpu.core_type<tc>, window_params = [{transform_indices = @transform_0, window_bounds = array<i64: 1, 160, 96>}, {pipeline_mode = #tpu.pipeline_mode<synchronous>, transform_indices = @transform_1, window_bounds = array<i64: 3, 96, 64>}, {pipeline_mode = #tpu.pipeline_mode<synchronous>, transform_indices = @transform_2, window_bounds = array<i64: 1, 64>}, {transform_indices = @transform_3, window_bounds = array<i64: 1, 64, 64>}]} {
    %c64_i32 = arith.constant 64 : i32
    %0 = arith.muli %arg1, %c64_i32 : i32
    %1 = tpu.assume_multiple %0, 16 : i32
    %c0 = arith.constant 0 : index
    %2 = arith.index_cast %1 : i32 to index
    %c0_0 = arith.constant 0 : index
    %3 = vector.load %arg2[%c0, %2, %c0_0] : memref<1x160x96xbf16, #tpu.memory_space<vmem>>, vector<1x64x96xbf16>
    %4 = vector.shape_cast %3 : vector<1x64x96xbf16> to vector<64x96xbf16>
    %c0_1 = arith.constant 0 : index
    %c0_2 = arith.constant 0 : index
    %c0_3 = arith.constant 0 : index
    %5 = vector.load %arg3[%c0_1, %c0_2, %c0_3] : memref<3x96x64xbf16, #tpu.memory_space<vmem>>, vector<1x96x64xbf16>
    %6 = vector.shape_cast %5 : vector<1x96x64xbf16> to vector<96x64xbf16>
    %cst = arith.constant dense<0.000000e+00> : vector<64x64xf32>
    %7 = tpu.matmul %4, %6, %cst {dimension_numbers = #tpu.dot_dimension_numbers<[1], [0], [0], [1], [0, 0, 1, 1], [], []>} : vector<64x96xbf16>, vector<96x64xbf16>, vector<64x64xf32> -> vector<64x64xf32>
    %c16_i32 = arith.constant 16 : i32
    %8 = arith.addi %1, %c16_i32 : i32
    %c0_4 = arith.constant 0 : index
    %9 = arith.index_cast %8 : i32 to index
    %c0_5 = arith.constant 0 : index
    %10 = vector.load %arg2[%c0_4, %9, %c0_5] : memref<1x160x96xbf16, #tpu.memory_space<vmem>>, vector<1x64x96xbf16>
    %11 = vector.shape_cast %10 : vector<1x64x96xbf16> to vector<64x96xbf16>
    %c1 = arith.constant 1 : index
    %c0_6 = arith.constant 0 : index
    %c0_7 = arith.constant 0 : index
    %12 = vector.load %arg3[%c1, %c0_6, %c0_7] : memref<3x96x64xbf16, #tpu.memory_space<vmem>>, vector<1x96x64xbf16>
    %13 = vector.shape_cast %12 : vector<1x96x64xbf16> to vector<96x64xbf16>
    %cst_8 = arith.constant dense<0.000000e+00> : vector<64x64xf32>
    %14 = tpu.matmul %11, %13, %cst_8 {dimension_numbers = #tpu.dot_dimension_numbers<[1], [0], [0], [1], [0, 0, 1, 1], [], []>} : vector<64x96xbf16>, vector<96x64xbf16>, vector<64x64xf32> -> vector<64x64xf32>
    %15 = arith.addf %7, %14 : vector<64x64xf32>
    %c32_i32 = arith.constant 32 : i32
    %16 = arith.addi %1, %c32_i32 : i32
    %c0_9 = arith.constant 0 : index
    %17 = arith.index_cast %16 : i32 to index
    %c0_10 = arith.constant 0 : index
    %18 = vector.load %arg2[%c0_9, %17, %c0_10] : memref<1x160x96xbf16, #tpu.memory_space<vmem>>, vector<1x64x96xbf16>
    %19 = vector.shape_cast %18 : vector<1x64x96xbf16> to vector<64x96xbf16>
    %c2 = arith.constant 2 : index
    %c0_11 = arith.constant 0 : index
    %c0_12 = arith.constant 0 : index
    %20 = vector.load %arg3[%c2, %c0_11, %c0_12] : memref<3x96x64xbf16, #tpu.memory_space<vmem>>, vector<1x96x64xbf16>
    %21 = vector.shape_cast %20 : vector<1x96x64xbf16> to vector<96x64xbf16>
    %cst_13 = arith.constant dense<0.000000e+00> : vector<64x64xf32>
    %22 = tpu.matmul %19, %21, %cst_13 {dimension_numbers = #tpu.dot_dimension_numbers<[1], [0], [0], [1], [0, 0, 1, 1], [], []>} : vector<64x96xbf16>, vector<96x64xbf16>, vector<64x64xf32> -> vector<64x64xf32>
    %23 = arith.addf %15, %22 : vector<64x64xf32>
    %c0_14 = arith.constant 0 : index
    %c0_15 = arith.constant 0 : index
    %24 = vector.load %arg4[%c0_14, %c0_15] : memref<1x64xf32, #tpu.memory_space<vmem>>, vector<1x64xf32>
    %25 = vector.broadcast %24 : vector<1x64xf32> to vector<64x64xf32>
    %26 = arith.addf %23, %25 : vector<64x64xf32>
    %cst_16 = arith.constant 0.000000e+00 : f32
    %27 = vector.broadcast %cst_16 : f32 to vector<64x64xf32>
    %28 = arith.maximumf %26, %27 : vector<64x64xf32>
    %29 = arith.truncf %28 : vector<64x64xf32> to vector<64x64xbf16>
    %c0_17 = arith.constant 0 : index
    %c0_18 = arith.constant 0 : index
    %c0_19 = arith.constant 0 : index
    %30 = vector.load %arg5[%c0_17, %c0_18, %c0_19] : memref<1x64x64xbf16, #tpu.memory_space<vmem>>, vector<1x64x64xbf16>
    %31 = vector.shape_cast %30 : vector<1x64x64xbf16> to vector<64x64xbf16>
    %32 = vector.shape_cast %29 : vector<64x64xbf16> to vector<1x64x64xbf16>
    tpu.vector_store %arg5[%c0_17, %c0_18, %c0_19], %32 {strides = array<i32>} : memref<1x64x64xbf16, #tpu.memory_space<vmem>>, vector<1x64x64xbf16>,
    return
  }
  func.func @transform_0(%arg0: i32, %arg1: i32) -> (i32, i32, i32) {
    %c0_i32 = arith.constant 0 : i32
    %c0_i32_0 = arith.constant 0 : i32
    %c0_i32_1 = arith.constant 0 : i32
    return %arg0, %c0_i32, %c0_i32_0 : i32, i32, i32
  }
  func.func @transform_1(%arg0: i32, %arg1: i32) -> (i32, i32, i32) {
    %c0_i32 = arith.constant 0 : i32
    %c0_i32_0 = arith.constant 0 : i32
    %c0_i32_1 = arith.constant 0 : i32
    %c0_i32_2 = arith.constant 0 : i32
    return %c0_i32, %c0_i32_0, %c0_i32_1 : i32, i32, i32
  }
  func.func @transform_2(%arg0: i32, %arg1: i32) -> (i32, i32) {
    %c0_i32 = arith.constant 0 : i32
    %c0_i32_0 = arith.constant 0 : i32
    %c0_i32_1 = arith.constant 0 : i32
    return %c0_i32, %c0_i32_0 : i32, i32
  }
  func.func @transform_3(%arg0: i32, %arg1: i32) -> (i32, i32, i32) {
    %c0_i32 = arith.constant 0 : i32
    %c0_i32_0 = arith.constant 0 : i32
    return %arg0, %arg1, %c0_i32 : i32, i32, i32
  }
}

module attributes {stable_mosaic.version = 11 : i64} {
  func.func @kernel(%arg0: i32, %arg1: i32, %arg2: memref<1x96x192xbf16, #tpu.memory_space<vmem>>, %arg3: memref<3x192x512xbf16, #tpu.memory_space<vmem>>, %arg4: memref<1x512xf32, #tpu.memory_space<vmem>>, %arg5: memref<1x1x512xf32, #tpu.memory_space<vmem>>, %arg6: memref<1x512xf32, #tpu.memory_space<vmem>>) attributes {dimension_semantics = [#tpu.dimension_semantics<parallel>, #tpu.dimension_semantics<arbitrary>], iteration_bounds = array<i64: 2, 2>, scalar_prefetch = 0 : i64, scratch_operands = 1 : i64, tpu.core_type = #tpu.core_type<tc>, window_params = [{transform_indices = @transform_0, window_bounds = array<i64: 1, 96, 192>}, {pipeline_mode = #tpu.pipeline_mode<synchronous>, transform_indices = @transform_1, window_bounds = array<i64: 3, 192, 512>}, {pipeline_mode = #tpu.pipeline_mode<synchronous>, transform_indices = @transform_2, window_bounds = array<i64: 1, 512>}, {transform_indices = @transform_3, window_bounds = array<i64: 1, 1, 512>}]} {
    %c0_i32 = arith.constant 0 : i32
    %0 = arith.cmpi eq, %arg1, %c0_i32 : i32
    %1 = arith.extui %0 : i1 to i32
    %c0_i32_0 = arith.constant 0 : i32
    %2 = arith.cmpi ne, %1, %c0_i32_0 : i32
    scf.if %2 {
      %cst_32 = arith.constant 0.000000e+00 : f32
      %63 = vector.broadcast %cst_32 : f32 to vector<1x512xf32>
      %c0_33 = arith.constant 0 : index
      %c0_34 = arith.constant 0 : index
      %64 = vector.load %arg6[%c0_33, %c0_34] : memref<1x512xf32, #tpu.memory_space<vmem>>, vector<1x512xf32>
      tpu.vector_store %arg6[%c0_33, %c0_34], %63 {strides = array<i32>} : memref<1x512xf32, #tpu.memory_space<vmem>>, vector<1x512xf32>,
    } else {
    }
    %c32_i32 = arith.constant 32 : i32
    %3 = arith.muli %arg1, %c32_i32 : i32
    %4 = tpu.assume_multiple %3, 16 : i32
    %c0 = arith.constant 0 : index
    %5 = arith.index_cast %4 : i32 to index
    %c0_1 = arith.constant 0 : index
    %6 = vector.load %arg2[%c0, %5, %c0_1] : memref<1x96x192xbf16, #tpu.memory_space<vmem>>, vector<1x32x192xbf16>
    %7 = vector.shape_cast %6 : vector<1x32x192xbf16> to vector<32x192xbf16>
    %c0_2 = arith.constant 0 : index
    %c0_3 = arith.constant 0 : index
    %c0_4 = arith.constant 0 : index
    %8 = vector.load %arg3[%c0_2, %c0_3, %c0_4] : memref<3x192x512xbf16, #tpu.memory_space<vmem>>, vector<1x192x512xbf16>
    %9 = vector.shape_cast %8 : vector<1x192x512xbf16> to vector<192x512xbf16>
    %cst = arith.constant dense<0.000000e+00> : vector<32x512xf32>
    %10 = tpu.matmul %7, %9, %cst {dimension_numbers = #tpu.dot_dimension_numbers<[1], [0], [0], [1], [0, 0, 1, 1], [], []>} : vector<32x192xbf16>, vector<192x512xbf16>, vector<32x512xf32> -> vector<32x512xf32>
    %c16_i32 = arith.constant 16 : i32
    %11 = arith.addi %4, %c16_i32 : i32
    %c0_5 = arith.constant 0 : index
    %12 = arith.index_cast %11 : i32 to index
    %c0_6 = arith.constant 0 : index
    %13 = vector.load %arg2[%c0_5, %12, %c0_6] : memref<1x96x192xbf16, #tpu.memory_space<vmem>>, vector<1x32x192xbf16>
    %14 = vector.shape_cast %13 : vector<1x32x192xbf16> to vector<32x192xbf16>
    %c1 = arith.constant 1 : index
    %c0_7 = arith.constant 0 : index
    %c0_8 = arith.constant 0 : index
    %15 = vector.load %arg3[%c1, %c0_7, %c0_8] : memref<3x192x512xbf16, #tpu.memory_space<vmem>>, vector<1x192x512xbf16>
    %16 = vector.shape_cast %15 : vector<1x192x512xbf16> to vector<192x512xbf16>
    %cst_9 = arith.constant dense<0.000000e+00> : vector<32x512xf32>
    %17 = tpu.matmul %14, %16, %cst_9 {dimension_numbers = #tpu.dot_dimension_numbers<[1], [0], [0], [1], [0, 0, 1, 1], [], []>} : vector<32x192xbf16>, vector<192x512xbf16>, vector<32x512xf32> -> vector<32x512xf32>
    %18 = arith.addf %10, %17 : vector<32x512xf32>
    %c32_i32_10 = arith.constant 32 : i32
    %19 = arith.addi %4, %c32_i32_10 : i32
    %c0_11 = arith.constant 0 : index
    %20 = arith.index_cast %19 : i32 to index
    %c0_12 = arith.constant 0 : index
    %21 = vector.load %arg2[%c0_11, %20, %c0_12] : memref<1x96x192xbf16, #tpu.memory_space<vmem>>, vector<1x32x192xbf16>
    %22 = vector.shape_cast %21 : vector<1x32x192xbf16> to vector<32x192xbf16>
    %c2 = arith.constant 2 : index
    %c0_13 = arith.constant 0 : index
    %c0_14 = arith.constant 0 : index
    %23 = vector.load %arg3[%c2, %c0_13, %c0_14] : memref<3x192x512xbf16, #tpu.memory_space<vmem>>, vector<1x192x512xbf16>
    %24 = vector.shape_cast %23 : vector<1x192x512xbf16> to vector<192x512xbf16>
    %cst_15 = arith.constant dense<0.000000e+00> : vector<32x512xf32>
    %25 = tpu.matmul %22, %24, %cst_15 {dimension_numbers = #tpu.dot_dimension_numbers<[1], [0], [0], [1], [0, 0, 1, 1], [], []>} : vector<32x192xbf16>, vector<192x512xbf16>, vector<32x512xf32> -> vector<32x512xf32>
    %26 = arith.addf %18, %25 : vector<32x512xf32>
    %c0_16 = arith.constant 0 : index
    %c0_17 = arith.constant 0 : index
    %27 = vector.load %arg4[%c0_16, %c0_17] : memref<1x512xf32, #tpu.memory_space<vmem>>, vector<1x512xf32>
    %28 = vector.broadcast %27 : vector<1x512xf32> to vector<32x512xf32>
    %29 = arith.addf %26, %28 : vector<32x512xf32>
    %cst_18 = arith.constant 0.000000e+00 : f32
    %30 = vector.broadcast %cst_18 : f32 to vector<32x512xf32>
    %31 = arith.maximumf %29, %30 : vector<32x512xf32>
    %32 = tpu.iota {dimensions = array<i32: 0>} : vector<32x1xi32>
    %c16_i32_19 = arith.constant 16 : i32
    %c0_i32_20 = arith.constant 0 : i32
    %33 = arith.cmpi eq, %c16_i32_19, %c0_i32_20 : i32
    %c1_i32 = arith.constant 1 : i32
    %34 = arith.select %33, %c1_i32, %c16_i32_19 : i32
    %35 = vector.broadcast %34 : i32 to vector<32x1xi32>
    %36 = arith.remsi %32, %35 : vector<32x1xi32>
    %c0_i32_21 = arith.constant 0 : i32
    %37 = vector.broadcast %c0_i32_21 : i32 to vector<32x1xi32>
    %38 = arith.cmpi ne, %36, %37 : vector<32x1xi32>
    %c0_i32_22 = arith.constant 0 : i32
    %39 = vector.broadcast %c0_i32_22 : i32 to vector<32x1xi32>
    %40 = arith.cmpi slt, %36, %39 : vector<32x1xi32>
    %c0_i32_23 = arith.constant 0 : i32
    %41 = arith.cmpi slt, %34, %c0_i32_23 : i32
    %42 = vector.broadcast %41 : i1 to vector<32x1xi1>
    %43 = vector.broadcast %42 : vector<32x1xi1> to vector<32x1xi1>
    %44 = arith.xori %40, %43 : vector<32x1xi1>
    %45 = arith.andi %44, %38 : vector<32x1xi1>
    %46 = vector.broadcast %34 : i32 to vector<32x1xi32>
    %47 = arith.addi %36, %46 : vector<32x1xi32>
    %48 = arith.select %45, %47, %36 : vector<32x1xi1>, vector<32x1xi32>
    %c4_i32 = arith.constant 4 : i32
    %49 = vector.broadcast %c4_i32 : i32 to vector<32x1xi32>
    %50 = arith.cmpi slt, %48, %49 : vector<32x1xi32>
    %cst_24 = arith.constant 0.000000e+00 : f32
    %51 = vector.shape_cast %50 : vector<32x1xi1> to vector<32x1xi1>
    %52 = vector.broadcast %51 : vector<32x1xi1> to vector<32x512xi1>
    %53 = vector.broadcast %cst_24 : f32 to vector<32x512xf32>
    %54 = arith.select %52, %31, %53 : vector<32x512xi1>, vector<32x512xf32>
    %c0_25 = arith.constant 0 : index
    %c0_26 = arith.constant 0 : index
    %55 = vector.load %arg6[%c0_25, %c0_26] : memref<1x512xf32, #tpu.memory_space<vmem>>, vector<1x512xf32>
    %cst_27 = arith.constant dense<0.000000e+00> : vector<512xf32>
    %56 = vector.multi_reduction <add>, %54, %cst_27 [0] : vector<32x512xf32> to vector<512xf32>
    %57 = vector.shape_cast %56 : vector<512xf32> to vector<1x512xf32>
    %58 = arith.addf %55, %57 : vector<1x512xf32>
    %c0_28 = arith.constant 0 : index
    %c0_29 = arith.constant 0 : index
    %59 = vector.load %arg6[%c0_28, %c0_29] : memref<1x512xf32, #tpu.memory_space<vmem>>, vector<1x512xf32>
    tpu.vector_store %arg6[%c0_28, %c0_29], %58 {strides = array<i32>} : memref<1x512xf32, #tpu.memory_space<vmem>>, vector<1x512xf32>,
    %c1_i32_30 = arith.constant 1 : i32
    %60 = arith.cmpi eq, %arg1, %c1_i32_30 : i32
    %61 = arith.extui %60 : i1 to i32
    %c0_i32_31 = arith.constant 0 : i32
    %62 = arith.cmpi ne, %61, %c0_i32_31 : i32
    scf.if %62 {
      %c0_32 = arith.constant 0 : index
      %c0_33 = arith.constant 0 : index
      %63 = vector.load %arg6[%c0_32, %c0_33] : memref<1x512xf32, #tpu.memory_space<vmem>>, vector<1x512xf32>
      %cst_34 = arith.constant 6.250000e-02 : f32
      %64 = vector.broadcast %cst_34 : f32 to vector<1x512xf32>
      %65 = arith.mulf %63, %64 : vector<1x512xf32>
      %c0_35 = arith.constant 0 : index
      %c0_36 = arith.constant 0 : index
      %c0_37 = arith.constant 0 : index
      %66 = vector.load %arg5[%c0_35, %c0_36, %c0_37] : memref<1x1x512xf32, #tpu.memory_space<vmem>>, vector<1x1x512xf32>
      %67 = vector.shape_cast %66 : vector<1x1x512xf32> to vector<1x512xf32>
      %68 = vector.shape_cast %65 : vector<1x512xf32> to vector<1x1x512xf32>
      tpu.vector_store %arg5[%c0_35, %c0_36, %c0_37], %68 {strides = array<i32>} : memref<1x1x512xf32, #tpu.memory_space<vmem>>, vector<1x1x512xf32>,
    } else {
    }
    return
  }
  func.func @transform_0(%arg0: i32, %arg1: i32) -> (i32, i32, i32) {
    %c0_i32 = arith.constant 0 : i32
    %c0_i32_0 = arith.constant 0 : i32
    %c0_i32_1 = arith.constant 0 : i32
    return %arg0, %c0_i32, %c0_i32_0 : i32, i32, i32
  }
  func.func @transform_1(%arg0: i32, %arg1: i32) -> (i32, i32, i32) {
    %c0_i32 = arith.constant 0 : i32
    %c0_i32_0 = arith.constant 0 : i32
    %c0_i32_1 = arith.constant 0 : i32
    %c0_i32_2 = arith.constant 0 : i32
    return %c0_i32, %c0_i32_0, %c0_i32_1 : i32, i32, i32
  }
  func.func @transform_2(%arg0: i32, %arg1: i32) -> (i32, i32) {
    %c0_i32 = arith.constant 0 : i32
    %c0_i32_0 = arith.constant 0 : i32
    %c0_i32_1 = arith.constant 0 : i32
    return %c0_i32, %c0_i32_0 : i32, i32
  }
  func.func @transform_3(%arg0: i32, %arg1: i32) -> (i32, i32, i32) {
    %c0_i32 = arith.constant 0 : i32
    %c0_i32_0 = arith.constant 0 : i32
    %c0_i32_1 = arith.constant 0 : i32
    return %arg0, %c0_i32, %c0_i32_0 : i32, i32, i32
  }
}

module attributes {stable_mosaic.version = 11 : i64} {
  func.func @_head_kernel(%arg0: i32, %arg1: memref<2x512xf32, #tpu.memory_space<vmem>>, %arg2: memref<512x128xf32, #tpu.memory_space<vmem>>, %arg3: memref<1x128xf32, #tpu.memory_space<vmem>>, %arg4: memref<2x8xf32, #tpu.memory_space<vmem>>) attributes {dimension_semantics = [#tpu.dimension_semantics<arbitrary>], iteration_bounds = array<i64: 1>, scalar_prefetch = 0 : i64, scratch_operands = 0 : i64, tpu.core_type = #tpu.core_type<tc>, window_params = [{pipeline_mode = #tpu.pipeline_mode<synchronous>, transform_indices = @transform_0, window_bounds = array<i64: 2, 512>}, {pipeline_mode = #tpu.pipeline_mode<synchronous>, transform_indices = @transform_1, window_bounds = array<i64: 512, 128>}, {pipeline_mode = #tpu.pipeline_mode<synchronous>, transform_indices = @transform_2, window_bounds = array<i64: 1, 128>}, {pipeline_mode = #tpu.pipeline_mode<synchronous>, transform_indices = @transform_3, window_bounds = array<i64: 2, 8>}]} {
    %c0 = arith.constant 0 : index
    %c0_0 = arith.constant 0 : index
    %0 = vector.load %arg1[%c0, %c0_0] : memref<2x512xf32, #tpu.memory_space<vmem>>, vector<2x512xf32>
    %c0_1 = arith.constant 0 : index
    %c0_2 = arith.constant 0 : index
    %1 = vector.load %arg2[%c0_1, %c0_2] : memref<512x128xf32, #tpu.memory_space<vmem>>, vector<512x128xf32>
    %cst = arith.constant dense<0.000000e+00> : vector<2x128xf32>
    %2 = tpu.matmul %0, %1, %cst {dimension_numbers = #tpu.dot_dimension_numbers<[1], [0], [0], [1], [0, 0, 1, 1], [], []>} : vector<2x512xf32>, vector<512x128xf32>, vector<2x128xf32> -> vector<2x128xf32>
    %c0_3 = arith.constant 0 : index
    %c0_4 = arith.constant 0 : index
    %3 = vector.load %arg3[%c0_3, %c0_4] : memref<1x128xf32, #tpu.memory_space<vmem>>, vector<1x128xf32>
    %4 = vector.broadcast %3 : vector<1x128xf32> to vector<2x128xf32>
    %5 = arith.addf %2, %4 : vector<2x128xf32>
    %6 = vector.extract_strided_slice %5 {offsets = [0, 0], sizes = [2, 4], strides = [1, 1]} : vector<2x128xf32> to vector<2x4xf32>
    %cst_5 = arith.constant dense<0xFF800000> : vector<2xf32>
    %7 = vector.multi_reduction <maximumf>, %6, %cst_5 [1] : vector<2x4xf32> to vector<2xf32>
    %8 = vector.shape_cast %7 : vector<2xf32> to vector<2x1xf32>
    %9 = vector.broadcast %8 : vector<2x1xf32> to vector<2x4xf32>
    %10 = arith.subf %6, %9 : vector<2x4xf32>
    %11 = math.exp %10 : vector<2x4xf32>
    %cst_6 = arith.constant dense<0.000000e+00> : vector<2xf32>
    %12 = vector.multi_reduction <add>, %11, %cst_6 [1] : vector<2x4xf32> to vector<2xf32>
    %13 = vector.shape_cast %12 : vector<2xf32> to vector<2x1xf32>
    %14 = vector.broadcast %13 : vector<2x1xf32> to vector<2x4xf32>
    %15 = arith.divf %11, %14 : vector<2x4xf32>
    %cst_7 = arith.constant 0.000000e+00 : f32
    %16 = vector.broadcast %cst_7 : f32 to vector<2x8xf32>
    %17 = vector.extract_strided_slice %5 {offsets = [0, 4], sizes = [2, 8], strides = [1, 1]} : vector<2x128xf32> to vector<2x8xf32>
    %cst_8 = arith.constant 0.000000e+00 : f32
    %18 = vector.broadcast %cst_8 : f32 to vector<2x8xf32>
    %19 = arith.maximumf %17, %18 : vector<2x8xf32>
    %20 = vector.extract_strided_slice %15 {offsets = [0, 0], sizes = [2, 1], strides = [1, 1]} : vector<2x4xf32> to vector<2x1xf32>
    %21 = vector.broadcast %20 : vector<2x1xf32> to vector<2x8xf32>
    %22 = arith.mulf %21, %19 : vector<2x8xf32>
    %23 = arith.addf %16, %22 : vector<2x8xf32>
    %24 = vector.extract_strided_slice %5 {offsets = [0, 12], sizes = [2, 8], strides = [1, 1]} : vector<2x128xf32> to vector<2x8xf32>
    %cst_9 = arith.constant 0.000000e+00 : f32
    %25 = vector.broadcast %cst_9 : f32 to vector<2x8xf32>
    %26 = arith.maximumf %24, %25 : vector<2x8xf32>
    %27 = vector.extract_strided_slice %15 {offsets = [0, 1], sizes = [2, 1], strides = [1, 1]} : vector<2x4xf32> to vector<2x1xf32>
    %28 = vector.broadcast %27 : vector<2x1xf32> to vector<2x8xf32>
    %29 = arith.mulf %28, %26 : vector<2x8xf32>
    %30 = arith.addf %23, %29 : vector<2x8xf32>
    %31 = vector.extract_strided_slice %5 {offsets = [0, 20], sizes = [2, 8], strides = [1, 1]} : vector<2x128xf32> to vector<2x8xf32>
    %cst_10 = arith.constant 0.000000e+00 : f32
    %32 = vector.broadcast %cst_10 : f32 to vector<2x8xf32>
    %33 = arith.maximumf %31, %32 : vector<2x8xf32>
    %34 = vector.extract_strided_slice %15 {offsets = [0, 2], sizes = [2, 1], strides = [1, 1]} : vector<2x4xf32> to vector<2x1xf32>
    %35 = vector.broadcast %34 : vector<2x1xf32> to vector<2x8xf32>
    %36 = arith.mulf %35, %33 : vector<2x8xf32>
    %37 = arith.addf %30, %36 : vector<2x8xf32>
    %38 = vector.extract_strided_slice %5 {offsets = [0, 28], sizes = [2, 8], strides = [1, 1]} : vector<2x128xf32> to vector<2x8xf32>
    %cst_11 = arith.constant 0.000000e+00 : f32
    %39 = vector.broadcast %cst_11 : f32 to vector<2x8xf32>
    %40 = arith.maximumf %38, %39 : vector<2x8xf32>
    %41 = vector.extract_strided_slice %15 {offsets = [0, 3], sizes = [2, 1], strides = [1, 1]} : vector<2x4xf32> to vector<2x1xf32>
    %42 = vector.broadcast %41 : vector<2x1xf32> to vector<2x8xf32>
    %43 = arith.mulf %42, %40 : vector<2x8xf32>
    %44 = arith.addf %37, %43 : vector<2x8xf32>
    %c0_12 = arith.constant 0 : index
    %c0_13 = arith.constant 0 : index
    %45 = vector.load %arg4[%c0_12, %c0_13] : memref<2x8xf32, #tpu.memory_space<vmem>>, vector<2x8xf32>
    tpu.vector_store %arg4[%c0_12, %c0_13], %44 {strides = array<i32>} : memref<2x8xf32, #tpu.memory_space<vmem>>, vector<2x8xf32>,
    return
  }
  func.func @transform_0(%arg0: i32) -> (i32, i32) {
    %c0_i32 = arith.constant 0 : i32
    %c0_i32_0 = arith.constant 0 : i32
    %c0_i32_1 = arith.constant 0 : i32
    return %c0_i32, %c0_i32_0 : i32, i32
  }
  func.func @transform_1(%arg0: i32) -> (i32, i32) {
    %c0_i32 = arith.constant 0 : i32
    %c0_i32_0 = arith.constant 0 : i32
    %c0_i32_1 = arith.constant 0 : i32
    return %c0_i32, %c0_i32_0 : i32, i32
  }
  func.func @transform_2(%arg0: i32) -> (i32, i32) {
    %c0_i32 = arith.constant 0 : i32
    %c0_i32_0 = arith.constant 0 : i32
    %c0_i32_1 = arith.constant 0 : i32
    return %c0_i32, %c0_i32_0 : i32, i32
  }
  func.func @transform_3(%arg0: i32) -> (i32, i32) {
    %c0_i32 = arith.constant 0 : i32
    %c0_i32_0 = arith.constant 0 : i32
    %c0_i32_1 = arith.constant 0 : i32
    return %c0_i32, %c0_i32_0 : i32, i32
  }
}

</mosaic_0001>

<bundles_post_ra>
// kernel: _lambda_.4
= control target key start
LH: loop header
LB: loop body
LE: loop exit
PB: predicated region body
PF: predicated region fallthrough
CT: control target
= control target key end

     0   :  { %s2119_s12 = smov 0   ;;  %s2121_s13 = smov 0   ;;  %s2430_s0 = inlined_call_operand.vmem [shape: bf16[2,576,12], index: 0, kind: input, shape index: {}]   ;;  %s2431_s1 = inlined_call_operand.vmem [shape: bf16[3,12,32], index: 1, kind: input, shape index: {}]   ;;  %s2432_s2 = inlined_call_operand.vmem [shape: f32[1,32], index: 2, kind: input, shape index: {}]   ;;  %s2433_s3 = inlined_call_operand.vmem [shape: bf16[2,512,32], index: 3, kind: output, shape index: {}]  }
   0x1   :  { %s2123_s14 = smov 0   ;;  %s2125_s15 = smov 0  }
   0x2   :  { %s2127_s16 = smov 0  }
   0x3 LB: > { %s22_s17 = sadd.s32 1, %s2089_s14  ;;  %s25_s18 = sadd.s32 1, %s2093_s15  ;;  %s2097_s16 = sphi %s2127_s16, %s13_s16   ;;  %s2093_s15 = sphi %s2125_s15, %s2437_s15   ;;  %s2089_s14 = sphi %s2123_s14, %s2436_s14   ;;  %s2085_s13 = sphi %s2121_s13, %s2435_s13   ;;  %s2081_s12 = sphi %s2119_s12, %s2434_s12  }
   0x4   : > { %p23_p0 = scmp.ge.s32.totalorder %s22_s17, 2  ;;  %p1565_p1 = scmp.ge.s32.totalorder %s2097_s16, 1 }
   0x5   : > { %p151_p2 = scmp.lt.s32.totalorder %s2097_s16, 5 }
   0x6   : > { %s2439_s17 = smov (%p23_p0, %s22_s17), 0  ;;  %s2441_s18 = smov (!%p23_p0, %s25_s18), %s2093_s15 }
   0x7   : > { %p152_p3 = pnand %p1565_p1, %p151_p2  ;;  %p27_p4 = scmp.ge.s32.totalorder %s2441_s18, 2 }
   0x8   : > { %v2008_v0 = vld [vmem:[%s2431_s1 + $0x8] sm:$0x3f] (!%p152_p3)   ;;  %vm408_vm0 = vcmask (!%p152_p3), 1045504   ;;  %p179_p5 = scmp.lt.s32.totalorder (!%p152_p3), %s2085_s13, 1  ;;  %v2009_v1 = vld [vmem:[%s2431_s1] sm:$0x3f] (!%p152_p3)  }
   0x9   : > { %s2443_s18 = smov (%p27_p4, %s2441_s18), 0  ;;  %155 = sbr.rel (%p152_p3) target bundleno = 337 (0x151), region = 32 }
   0xa   : > { %1963 = vmatprep.subr.msk.bf16.mxu1 (!%p152_p3), %vm408_vm0, %v2008_v0  ;;  %v410_v2 = vsel (!%p152_p3), %vm408_vm0, %v2008_v0, 0  ;;  %s2160_s23 = sshll.u32 (!%p152_p3), %s2081_s12, 8  ;;  %1964 = vmatprep.subr.msk.bf16.mxu0 (!%p152_p3), %vm408_vm0, %v2009_v1  ;;  %v707_v3 = vsel (!%p152_p3), %vm408_vm0, %v2009_v1, 0  ;;  %v2012_v4 = vld [vmem:[%s2431_s1 + $0x10] sm:$0x3f] (!%p152_p3)   ;;  %vm359_vm1 = vcmask (!%p152_p3), 97280  }
   0xb   : > { %1796 = vmatpush3.bf16.msra.mxu1 (!%p152_p3), %v410_v2  ;;  %s234_s24 = sadd.s32 (!%p152_p3), 32, %s2160_s23  ;;  %1830 = vmatpush3.bf16.msra.mxu0 (!%p152_p3), %v707_v3  ;;  %s196_s7 = sshra.s32 (!%p152_p3), %s2160_s23, 3  ;;  %v1044_v10 = vsel (!%p152_p3), %vm408_vm0, %v2012_v4, 0  ;;  %vm1438_vm2 = vcmask (!%p152_p3), 257024  }
   0xc   : > { %1965 = vmatprep.subr.msk.bf16.mxu1 (!%p152_p3), %vm408_vm0, %v2009_v1  ;;  %s235_s28 = sshra.s32 (!%p152_p3), %s234_s24, 3  ;;  %1966 = vmatprep.subr.msk.bf16.mxu0 (!%p152_p3), %vm408_vm0, %v2012_v4  ;;  %s1571_s8 = sshll.u32 (!%p152_p3), %s196_s7, 2 }
   0xd   : > { %s1572_s5 = sshll.u32 (!%p152_p3), %s235_s28, 2  ;;  %s870_s10 = sadd.s32 (!%p152_p3), 64, %s2160_s23 }
   0xe   : > { %s871_s11 = sshra.s32 (!%p152_p3), %s870_s10, 3  ;;  %s1567_s21 = sshll.u32 (!%p152_p3), %s2081_s12, 5 }
   0xf   : > { %s1641_s19 = sshll.u32 (!%p152_p3), %s871_s11, 2  ;;  %p187_p6 = scmp.lt.s32.totalorder (!%p152_p3), %s1567_s21, 63 }
  0x10   : > { %s2445_s13 = smov (!%p179_p5, %s2085_s13), 1 }
  0x11   : > { %s1967_s27 = smul.u32 288, %s2445_s13  ;;  %s2447_s21 = smov (!%p187_p6, %s1567_s21), 63 }
  0x12   : > { %s1568_s22 = sshll.u32 %s2445_s13, 6 }
  0x13   : > { %s2176_s4 = scalar_lea.vmem %s2430_s0, %s1967_s27  ;;  %s190_s23 = sadd.s32 %s1568_s22, %s2447_s21 }
  0x14   : > { %s2179_s6 = scalar_lea.vmem %s2176_s4, %s1572_s5  ;;  %s2186_s9 = scalar_lea.vmem %s2176_s4, %s1571_s8 }
  0x15   : > { %v2010_v5 = vld [vmem:[%s2179_s6] sm:$0xff]   ;;  %v2013_v6 = vld [vmem:[%s2179_s6 + $0x8] sm:$0xff]   ;;  %v2015_v7 = vld [vmem:[%s2179_s6 + $0x10] sm:$0xff]   ;;  %s2209_s20 = scalar_lea.vmem %s2176_s4, %s1641_s19  ;;  %s1569_s12 = sshll.u32 %s190_s23, 2 }
  0x16   : > { %1797 = vmatprep.mubr.msk.bf16.mxu1 %vm359_vm1, %v2010_v5  ;;  %v2011_v8 = vld [vmem:[%s2186_s9] sm:$0xff]   ;;  %v2014_v9 = vld [vmem:[%s2186_s9 + $0x8] sm:$0xff]   ;;  %v2016_v11 = vld [vmem:[%s2186_s9 + $0x10] sm:$0xff]   ;;  %s2313_s27 = scalar_lea.vmem %s2433_s3, %s1569_s12 }
  0x17   : > { %1798 = vmatmul.mubr.msk.bf16.vlgmr.msra.gmra.mrb[0].mxu1 %vm359_vm1, %v2013_v6  ;;  %1831 = vmatprep.mubr.msk.bf16.mxu0 %vm359_vm1, %v2011_v8  ;;  %v2017_v12 = vld [vmem:[%s2179_s6 + $0x18] sm:$0xff]   ;;  %v2019_v13 = vld [vmem:[%s2179_s6 + $0x20] sm:$0xff]   ;;  %v2021_v16 = vld [vmem:[%s2179_s6 + $0x28] sm:$0xff]  }
  0x18   : > { %1898 = vmatpush3.bf16.msra.mxu1 %v707_v3  ;;  %1801 = vmatprep.mubr.msk.bf16.mxu1 %vm359_vm1, %v2015_v7  ;;  %v2018_v14 = vld [vmem:[%s2186_s9 + $0x18] sm:$0xff]   ;;  %v2020_v15 = vld [vmem:[%s2186_s9 + $0x20] sm:$0xff]   ;;  %v2023_v17 = vld [vmem:[%s2179_s6 + $0x30] sm:$0xff]  }
  0x19   : > { %1832 = vmatmul.mubr.msk.bf16.vlgmr.msra.gmra.mrb[0].mxu0 %vm359_vm1, %v2014_v9  ;;  %v2022_v18 = vld [vmem:[%s2186_s9 + $0x28] sm:$0xff]   ;;  %v2024_v19 = vld [vmem:[%s2186_s9 + $0x30] sm:$0xff]   ;;  %v2025_v20 = vld [vmem:[%s2179_s6 + $0x38] sm:$0xff]  }
  0x1a   : > { %1864 = vmatpush3.bf16.msra.mxu0 %v1044_v10  ;;  %1835 = vmatprep.mubr.msk.bf16.mxu0 %vm359_vm1, %v2016_v11  ;;  %v2027_v21 = vld [vmem:[%s2179_s6 + $0x40] sm:$0xff]   ;;  %v2026_v22 = vld [vmem:[%s2186_s9 + $0x38] sm:$0xff]   ;;  %v2029_v24 = vld [vmem:[%s2179_s6 + $0x48] sm:$0xff]  }
  0x1b   : > { %v2028_v23 = vld [vmem:[%s2209_s20] sm:$0xff]   ;;  %v2031_v25 = vld [vmem:[%s2179_s6 + $0x50] sm:$0xff]   ;;  %v2030_v26 = vld [vmem:[%s2209_s20 + $0x8] sm:$0xff]  }
  0x1c   : > { %v2032_v27 = vld [vmem:[%s2209_s20 + $0x10] sm:$0xff]   ;;  %v2033_v28 = vld [vmem:[%s2179_s6 + $0x58] sm:$0xff]   ;;  %v2035_v29 = vld [vmem:[%s2179_s6 + $0x60] sm:$0xff]  }
  0x1d   : > { %v2034_v30 = vld [vmem:[%s2209_s20 + $0x18] sm:$0xff]   ;;  %v2036_v31 = vld [vmem:[%s2209_s20 + $0x20] sm:$0xff]   ;;  %v2037_v32 = vld [vmem:[%s2179_s6 + $0x68] sm:$0xff]  }
  0x1e   : > { %v2039_v33 = vld [vmem:[%s2179_s6 + $0x70] sm:$0xff]   ;;  %v2038_v34 = vld [vmem:[%s2209_s20 + $0x28] sm:$0xff]   ;;  %v2041_v36 = vld [vmem:[%s2179_s6 + $0x78] sm:$0xff]  }
  0x1f   : > { %1802 = vmatmul.mubr.msk.bf16.gmra.mrb[4].mxu1 %vm359_vm1, %v2017_v12  ;;  %v2040_v35 = vld [vmem:[%s2209_s20 + $0x30] sm:$0xff]   ;;  %v2043_v37 = vld [vmem:[%s2186_s9 + $0x40] sm:$0xff]   ;;  %v2042_v38 = vld [vmem:[%s2209_s20 + $0x38] sm:$0xff]  }
  0x20   : > { %1805 = vmatprep.mubr.msk.bf16.mxu1 %vm359_vm1, %v2019_v13  ;;  %v2044_v39 = vld [vmem:[%s2209_s20 + $0x40] sm:$0xff]   ;;  %v2045_v40 = vld [vmem:[%s2186_s9 + $0x48] sm:$0xff]   ;;  %v2047_v41 = vld [vmem:[%s2186_s9 + $0x50] sm:$0xff]  }
  0x21   : > { %1836 = vmatmul.mubr.msk.bf16.gmra.mrb[4].mxu0 %vm359_vm1, %v2018_v14  ;;  %v2046_v42 = vld [vmem:[%s2209_s20 + $0x48] sm:$0xff]   ;;  %v2048_v43 = vld [vmem:[%s2209_s20 + $0x50] sm:$0xff]   ;;  %v2049_v44 = vld [vmem:[%s2186_s9 + $0x58] sm:$0xff]  }
  0x22   : > { %1839 = vmatprep.mubr.msk.bf16.mxu0 %vm359_vm1, %v2020_v15  ;;  %v2051_v45 = vld [vmem:[%s2186_s9 + $0x60] sm:$0xff]   ;;  %v2050_v46 = vld [vmem:[%s2209_s20 + $0x58] sm:$0xff]   ;;  %v2053_v48 = vld [vmem:[%s2186_s9 + $0x68] sm:$0xff]  }
  0x23   : > { %v2052_v47 = vld [vmem:[%s2209_s20 + $0x60] sm:$0xff]   ;;  %v2055_v49 = vld [vmem:[%s2186_s9 + $0x70] sm:$0xff]   ;;  %v2054_v50 = vld [vmem:[%s2209_s20 + $0x68] sm:$0xff]  }
  0x24   : > { %v2056_v51 = vld [vmem:[%s2209_s20 + $0x70] sm:$0xff]   ;;  %v2057_v52 = vld [vmem:[%s2186_s9 + $0x78] sm:$0xff]   ;;  %v2305_v7 = vld [vmem:[%s2432_s2] ss:$0 sm:$0xff] }
  0x25   : > { %v2058_v53 = vld [vmem:[%s2209_s20 + $0x78] sm:$0xff]  }
  0x27   : > { %1806 = vmatmul.mubr.msk.bf16.gmra.mrb[8].mxu1 %vm359_vm1, %v2021_v16 }
  0x28   : > { %1809 = vmatprep.mubr.msk.bf16.mxu1 %vm359_vm1, %v2023_v17 }
  0x29   : > { %1840 = vmatmul.mubr.msk.bf16.gmra.mrb[8].mxu0 %vm359_vm1, %v2022_v18 }
  0x2a   : > { %1843 = vmatprep.mubr.msk.bf16.mxu0 %vm359_vm1, %v2024_v19 }
  0x2f   : > { %1810 = vmatmul.mubr.msk.bf16.gmra.mrb[12].mxu1 %vm359_vm1, %v2025_v20 }
  0x30   : > { %1813 = vmatprep.mubr.msk.bf16.mxu1 %vm359_vm1, %v2027_v21 }
  0x31   : > { %1844 = vmatmul.mubr.msk.bf16.gmra.mrb[12].mxu0 %vm359_vm1, %v2026_v22 }
  0x32   : > { %1865 = vmatprep.mubr.msk.bf16.mxu0 %vm359_vm1, %v2028_v23 }
  0x37   : > { %1814 = vmatmul.mubr.msk.bf16.gmra.mrb[16].mxu1 %vm359_vm1, %v2029_v24 }
  0x38   : > { %1817 = vmatprep.mubr.msk.bf16.mxu1 %vm359_vm1, %v2031_v25 }
  0x39   : > { %1866 = vmatmul.mubr.msk.bf16.vlgmr.msra.gmra.mrb[0].mxu0 %vm359_vm1, %v2030_v26 }
  0x3a   : > { %1869 = vmatprep.mubr.msk.bf16.mxu0 %vm359_vm1, %v2032_v27 }
  0x3f   : > { %1818 = vmatmul.mubr.msk.bf16.gmra.mrb[20].mxu1 %vm359_vm1, %v2033_v28 }
  0x40   : > { %1821 = vmatprep.mubr.msk.bf16.mxu1 %vm359_vm1, %v2035_v29 }
  0x41   : > { %1870 = vmatmul.mubr.msk.bf16.gmra.mrb[4].mxu0 %vm359_vm1, %v2034_v30 }
  0x42   : > { %1873 = vmatprep.mubr.msk.bf16.mxu0 %vm359_vm1, %v2036_v31 }
  0x47   : > { %1822 = vmatmul.mubr.msk.bf16.gmra.mrb[24].mxu1 %vm359_vm1, %v2037_v32 }
  0x48   : > { %1825 = vmatprep.mubr.msk.bf16.mxu1 %vm359_vm1, %v2039_v33 }
  0x49   : > { %1874 = vmatmul.mubr.msk.bf16.gmra.mrb[8].mxu0 %vm359_vm1, %v2038_v34 }
  0x4a   : > { %1877 = vmatprep.mubr.msk.bf16.mxu0 %vm359_vm1, %v2040_v35 }
  0x4f   : > { %1826 = vmatmul.mubr.msk.bf16.gmra.mrb[28].mxu1 %vm359_vm1, %v2041_v36 }
  0x50   : > { %1847 = vmatprep.mubr.msk.bf16.mxu1 %vm359_vm1, %v2043_v37 }
  0x51   : > { %1878 = vmatmul.mubr.msk.bf16.gmra.mrb[12].mxu0 %vm359_vm1, %v2042_v38 }
  0x52   : > { %1881 = vmatprep.mubr.msk.bf16.mxu0 %vm359_vm1, %v2044_v39 }
  0x57   : > { %1848 = vmatmul.mubr.msk.bf16.vlgmr.msra.gmra.mrb[16].mxu1 %vm359_vm1, %v2045_v40 }
  0x58   : > { %1851 = vmatprep.mubr.msk.bf16.mxu1 %vm359_vm1, %v2047_v41 }
  0x59   : > { %1882 = vmatmul.mubr.msk.bf16.gmra.mrb[16].mxu0 %vm359_vm1, %v2046_v42 }
  0x5a   : > { %1885 = vmatprep.mubr.msk.bf16.mxu0 %vm359_vm1, %v2048_v43 }
  0x5f   : > { %1852 = vmatmul.mubr.msk.bf16.gmra.mrb[20].mxu1 %vm359_vm1, %v2049_v44 }
  0x60   : > { %1855 = vmatprep.mubr.msk.bf16.mxu1 %vm359_vm1, %v2051_v45 }
  0x61   : > { %1886 = vmatmul.mubr.msk.bf16.gmra.mrb[20].mxu0 %vm359_vm1, %v2050_v46 }
  0x62   : > { %1889 = vmatprep.mubr.msk.bf16.mxu0 %vm359_vm1, %v2052_v47 }
  0x67   : > { %1856 = vmatmul.mubr.msk.bf16.gmra.mrb[24].mxu1 %vm359_vm1, %v2053_v48 }
  0x68   : > { %1859 = vmatprep.mubr.msk.bf16.mxu1 %vm359_vm1, %v2055_v49 }
  0x69   : > { %1890 = vmatmul.mubr.msk.bf16.gmra.mrb[24].mxu0 %vm359_vm1, %v2054_v50 }
  0x6a   : > { %1893 = vmatprep.mubr.msk.bf16.mxu0 %vm359_vm1, %v2056_v51 }
  0x6f   : > { %1860 = vmatmul.mubr.msk.bf16.gmra.mrb[28].mxu1 %vm359_vm1, %v2057_v52 }
  0x71   : > { %1894 = vmatmul.mubr.msk.bf16.gmra.mrb[28].mxu0 %vm359_vm1, %v2058_v53 }
  0xea   : > { %v1799_v54 = vpop.f32.mrb[0].mxu1 }
  0xeb   : > { %v446_v55 = vpop.f32.mrb[1].mxu1 }
  0xec   : > { %v1800_v56 = vpop.f32.mrb[2].mxu1 }
  0xed   : > { %v449_v57 = vpop.f32.mrb[3].mxu1 }
  0xf2   : > { %v1803_v58 = vpop.f32.mrb[4].mxu1 }
  0xf3   : > { %v462_v59 = vpop.f32.mrb[5].mxu1 }
  0xf4   : > { %v1804_v60 = vpop.f32.mrb[6].mxu1 }
  0xf5   : > { %v465_v61 = vpop.f32.mrb[7].mxu1 }
  0xfa   : > { %v1807_v62 = vpop.f32.mrb[8].mxu1 }
  0xfb   : > { %v2286_v63 = vpop.f32.mrb[9].mxu1 }
  0xfc   : > { %v2288_v0 = vpop.f32.mrb[10].mxu1 }
  0xfd   : > { %v2290_v1 = vpop.f32.mrb[11].mxu1 }
 0x102   : > { %v2292_v2 = vpop.f32.mrb[12].mxu1 }
 0x103   : > { %v2295_v3 = vpop.f32.mrb[13].mxu1 }
 0x104   : > { %v2297_v4 = vpop.f32.mrb[14].mxu1 }
 0x105   : > { %v2299_v5 = vpop.f32.mrb[15].mxu1 }
 0x10c   : > { %v1867_v6 = vpop.f32.mrb[0].mxu0 }
 0x10d   : > { %v1899_v8 = vadd.f32 %v1867_v6, %v1799_v54  ;;  %v1080_v9 = vpop.f32.mrb[1].mxu0 }
 0x10e   : > { %v1900_v10 = vadd.f32 %v1080_v9, %v446_v55  ;;  %v1868_v11 = vpop.f32.mrb[2].mxu0 }
 0x10f   : > { %v1248_v12 = vadd.f32 %v1899_v8, %v2305_v7  ;;  %v1901_v13 = vadd.f32 %v1868_v11, %v1800_v56  ;;  %v1083_v14 = vpop.f32.mrb[3].mxu0 }
 0x110   : > { %v1246_v15 = vadd.f32 %v1900_v10, %v2305_v7  ;;  %v1902_v16 = vadd.f32 %v1083_v14, %v449_v57 }
 0x111   : > { %v1280_v17 = vmax.f32 %v1248_v12, 0.0  ;;  %v1249_v18 = vadd.f32 %v1901_v13, %v2305_v7 }
 0x112   : > { %v1278_v19 = vmax.f32 %v1246_v15, 0.0  ;;  %v1247_v20 = vadd.f32 %v1902_v16, %v2305_v7 }
 0x113   : > { %v1714_v21 = vpack.c.bf16 %v1280_v17, %v1280_v17  ;;  %v1281_v22 = vmax.f32 %v1249_v18, 0.0 }
 0x114   : > { %v1712_v23 = vpack.c.bf16 %v1278_v19, %v1278_v19  ;;  %v1279_v24 = vmax.f32 %v1247_v20, 0.0  ;;  %v1871_v25 = vpop.f32.mrb[4].mxu0 }
 0x115   : > { %1441 = vst.msk [vmem:[%s2313_s27 + $0x8] sm:$0xf] %vm1438_vm2, %v1714_v21  ;;  %v1715_v26 = vpack.c.bf16 %v1281_v22, %v1281_v22  ;;  %v1903_v27 = vadd.f32 %v1871_v25, %v1803_v58  ;;  %v1096_v28 = vpop.f32.mrb[5].mxu0 }
 0x116   : > { %1439 = vst.msk [vmem:[%s2313_s27] sm:$0xf] %vm1438_vm2, %v1712_v23  ;;  %v1713_v29 = vpack.c.bf16 %v1279_v24, %v1279_v24  ;;  %v1904_v30 = vadd.f32 %v1096_v28, %v462_v59  ;;  %v1872_v31 = vpop.f32.mrb[6].mxu0 }
 0x117   : > { %1442 = vst.msk [vmem:[%s2313_s27 + $0xc] sm:$0xf] %vm1438_vm2, %v1715_v26  ;;  %v1252_v32 = vadd.f32 %v1903_v27, %v2305_v7  ;;  %v1905_v33 = vadd.f32 %v1872_v31, %v1804_v60  ;;  %v1099_v34 = vpop.f32.mrb[7].mxu0 }
 0x118   : > { %1440 = vst.msk [vmem:[%s2313_s27 + $0x4] sm:$0xf] %vm1438_vm2, %v1713_v29  ;;  %v1250_v35 = vadd.f32 %v1904_v30, %v2305_v7  ;;  %v1906_v36 = vadd.f32 %v1099_v34, %v465_v61 }
 0x119   : > { %v1284_v37 = vmax.f32 %v1252_v32, 0.0  ;;  %v1253_v38 = vadd.f32 %v1905_v33, %v2305_v7 }
 0x11a   : > { %v1282_v39 = vmax.f32 %v1250_v35, 0.0  ;;  %v1251_v40 = vadd.f32 %v1906_v36, %v2305_v7 }
 0x11b   : > { %v1718_v41 = vpack.c.bf16 %v1284_v37, %v1284_v37  ;;  %v1285_v42 = vmax.f32 %v1253_v38, 0.0 }
 0x11c   : > { %v1716_v43 = vpack.c.bf16 %v1282_v39, %v1282_v39  ;;  %v1283_v44 = vmax.f32 %v1251_v40, 0.0  ;;  %v1875_v45 = vpop.f32.mrb[8].mxu0 }
 0x11d   : > { %1445 = vst.msk [vmem:[%s2313_s27 + $0x18] sm:$0xf] %vm1438_vm2, %v1718_v41  ;;  %v1719_v46 = vpack.c.bf16 %v1285_v42, %v1285_v42  ;;  %v1907_v47 = vadd.f32 %v1875_v45, %v1807_v62  ;;  %v1112_v48 = vpop.f32.mrb[9].mxu0 }
 0x11e   : > { %1443 = vst.msk [vmem:[%s2313_s27 + $0x10] sm:$0xf] %vm1438_vm2, %v1716_v43  ;;  %v1717_v49 = vpack.c.bf16 %v1283_v44, %v1283_v44  ;;  %v1908_v50 = vadd.f32 %v1112_v48, %v2286_v63  ;;  %v1876_v51 = vpop.f32.mrb[10].mxu0 }
 0x11f   : > { %1446 = vst.msk [vmem:[%s2313_s27 + $0x1c] sm:$0xf] %vm1438_vm2, %v1719_v46  ;;  %v1256_v52 = vadd.f32 %v1907_v47, %v2305_v7  ;;  %v1909_v53 = vadd.f32 %v1876_v51, %v2288_v0  ;;  %v1115_v54 = vpop.f32.mrb[11].mxu0 }
 0x120   : > { %1444 = vst.msk [vmem:[%s2313_s27 + $0x14] sm:$0xf] %vm1438_vm2, %v1717_v49  ;;  %v1254_v55 = vadd.f32 %v1908_v50, %v2305_v7  ;;  %v1910_v56 = vadd.f32 %v1115_v54, %v2290_v1 }
 0x121   : > { %v1288_v57 = vmax.f32 %v1256_v52, 0.0  ;;  %v1257_v58 = vadd.f32 %v1909_v53, %v2305_v7 }
 0x122   : > { %v1286_v59 = vmax.f32 %v1254_v55, 0.0  ;;  %v1255_v60 = vadd.f32 %v1910_v56, %v2305_v7 }
 0x123   : > { %v1722_v61 = vpack.c.bf16 %v1288_v57, %v1288_v57  ;;  %v1289_v62 = vmax.f32 %v1257_v58, 0.0 }
 0x124   : > { %v1720_v63 = vpack.c.bf16 %v1286_v59, %v1286_v59  ;;  %v1287_v0 = vmax.f32 %v1255_v60, 0.0  ;;  %v1879_v6 = vpop.f32.mrb[12].mxu0 }
 0x125   : > { %1449 = vst.msk [vmem:[%s2313_s27 + $0x28] sm:$0xf] %vm1438_vm2, %v1722_v61  ;;  %v1723_v8 = vpack.c.bf16 %v1289_v62, %v1289_v62  ;;  %v1911_v9 = vadd.f32 %v1879_v6, %v2292_v2  ;;  %v1128_v10 = vpop.f32.mrb[13].mxu0 }
 0x126   : > { %1447 = vst.msk [vmem:[%s2313_s27 + $0x20] sm:$0xf] %vm1438_vm2, %v1720_v63  ;;  %v1721_v1 = vpack.c.bf16 %v1287_v0, %v1287_v0  ;;  %v1912_v11 = vadd.f32 %v1128_v10, %v2295_v3  ;;  %v1880_v12 = vpop.f32.mrb[14].mxu0 }
 0x127   : > { %1450 = vst.msk [vmem:[%s2313_s27 + $0x2c] sm:$0xf] %vm1438_vm2, %v1723_v8  ;;  %v1260_v13 = vadd.f32 %v1911_v9, %v2305_v7  ;;  %v1913_v14 = vadd.f32 %v1880_v12, %v2297_v4  ;;  %v1131_v15 = vpop.f32.mrb[15].mxu0 }
 0x128   : > { %1448 = vst.msk [vmem:[%s2313_s27 + $0x24] sm:$0xf] %vm1438_vm2, %v1721_v1  ;;  %v1258_v16 = vadd.f32 %v1912_v11, %v2305_v7  ;;  %v1914_v2 = vadd.f32 %v1131_v15, %v2299_v5 }
 0x129   : > { %v1292_v17 = vmax.f32 %v1260_v13, 0.0  ;;  %v1261_v18 = vadd.f32 %v1913_v14, %v2305_v7 }
 0x12a   : > { %v1849_v3 = vpop.f32.mrb[16].mxu1  ;;  %v1290_v19 = vmax.f32 %v1258_v16, 0.0  ;;  %v1259_v20 = vadd.f32 %v1914_v2, %v2305_v7 }
 0x12b   : > { %v807_v21 = vpop.f32.mrb[17].mxu1  ;;  %v1726_v22 = vpack.c.bf16 %v1292_v17, %v1292_v17  ;;  %v1293_v4 = vmax.f32 %v1261_v18, 0.0 }
 0x12c   : > { %v1850_v23 = vpop.f32.mrb[18].mxu1  ;;  %v1724_v24 = vpack.c.bf16 %v1290_v19, %v1290_v19  ;;  %v1291_v25 = vmax.f32 %v1259_v20, 0.0  ;;  %v1883_v26 = vpop.f32.mrb[16].mxu0 }
 0x12d   : > { %v810_v27 = vpop.f32.mrb[19].mxu1  ;;  %1453 = vst.msk [vmem:[%s2313_s27 + $0x38] sm:$0xf] %vm1438_vm2, %v1726_v22  ;;  %v1727_v5 = vpack.c.bf16 %v1293_v4, %v1293_v4  ;;  %v1915_v28 = vadd.f32 %v1883_v26, %v1849_v3  ;;  %v1144_v29 = vpop.f32.mrb[17].mxu0 }
 0x12e   : > { %1451 = vst.msk [vmem:[%s2313_s27 + $0x30] sm:$0xf] %vm1438_vm2, %v1724_v24  ;;  %v1725_v30 = vpack.c.bf16 %v1291_v25, %v1291_v25  ;;  %v1916_v31 = vadd.f32 %v1144_v29, %v807_v21  ;;  %v1884_v32 = vpop.f32.mrb[18].mxu0 }
 0x12f   : > { %1454 = vst.msk [vmem:[%s2313_s27 + $0x3c] sm:$0xf] %vm1438_vm2, %v1727_v5  ;;  %v1264_v33 = vadd.f32 %v1915_v28, %v2305_v7  ;;  %v1917_v34 = vadd.f32 %v1884_v32, %v1850_v23  ;;  %v1147_v35 = vpop.f32.mrb[19].mxu0 }
 0x130   : > { %1452 = vst.msk [vmem:[%s2313_s27 + $0x34] sm:$0xf] %vm1438_vm2, %v1725_v30  ;;  %v1262_v36 = vadd.f32 %v1916_v31, %v2305_v7  ;;  %v1918_v37 = vadd.f32 %v1147_v35, %v810_v27 }
 0x131   : > { %v1296_v38 = vmax.f32 %v1264_v33, 0.0  ;;  %v1265_v39 = vadd.f32 %v1917_v34, %v2305_v7 }
 0x132   : > { %v1853_v40 = vpop.f32.mrb[20].mxu1  ;;  %v1294_v41 = vmax.f32 %v1262_v36, 0.0  ;;  %v1263_v42 = vadd.f32 %v1918_v37, %v2305_v7 }
 0x133   : > { %v823_v43 = vpop.f32.mrb[21].mxu1  ;;  %v1730_v44 = vpack.c.bf16 %v1296_v38, %v1296_v38  ;;  %v1297_v45 = vmax.f32 %v1265_v39, 0.0 }
 0x134   : > { %v1854_v46 = vpop.f32.mrb[22].mxu1  ;;  %v1728_v47 = vpack.c.bf16 %v1294_v41, %v1294_v41  ;;  %v1295_v48 = vmax.f32 %v1263_v42, 0.0  ;;  %v1887_v49 = vpop.f32.mrb[20].mxu0 }
 0x135   : > { %v826_v50 = vpop.f32.mrb[23].mxu1  ;;  %1457 = vst.msk [vmem:[%s2313_s27 + $0x48] sm:$0xf] %vm1438_vm2, %v1730_v44  ;;  %v1731_v51 = vpack.c.bf16 %v1297_v45, %v1297_v45  ;;  %v1919_v52 = vadd.f32 %v1887_v49, %v1853_v40  ;;  %v1160_v53 = vpop.f32.mrb[21].mxu0 }
 0x136   : > { %1455 = vst.msk [vmem:[%s2313_s27 + $0x40] sm:$0xf] %vm1438_vm2, %v1728_v47  ;;  %v1729_v54 = vpack.c.bf16 %v1295_v48, %v1295_v48  ;;  %v1920_v55 = vadd.f32 %v1160_v53, %v823_v43  ;;  %v1888_v56 = vpop.f32.mrb[22].mxu0 }
 0x137   : > { %1458 = vst.msk [vmem:[%s2313_s27 + $0x4c] sm:$0xf] %vm1438_vm2, %v1731_v51  ;;  %v1268_v57 = vadd.f32 %v1919_v52, %v2305_v7  ;;  %v1921_v58 = vadd.f32 %v1888_v56, %v1854_v46  ;;  %v1163_v59 = vpop.f32.mrb[23].mxu0 }
 0x138   : > { %1456 = vst.msk [vmem:[%s2313_s27 + $0x44] sm:$0xf] %vm1438_vm2, %v1729_v54  ;;  %v1266_v60 = vadd.f32 %v1920_v55, %v2305_v7  ;;  %v1922_v61 = vadd.f32 %v1163_v59, %v826_v50 }
 0x139   : > { %v1300_v62 = vmax.f32 %v1268_v57, 0.0  ;;  %v1269_v63 = vadd.f32 %v1921_v58, %v2305_v7 }
 0x13a   : > { %v1857_v0 = vpop.f32.mrb[24].mxu1  ;;  %v1298_v6 = vmax.f32 %v1266_v60, 0.0  ;;  %v1267_v8 = vadd.f32 %v1922_v61, %v2305_v7 }
 0x13b   : > { %v839_v9 = vpop.f32.mrb[25].mxu1  ;;  %v1734_v10 = vpack.c.bf16 %v1300_v62, %v1300_v62  ;;  %v1301_v1 = vmax.f32 %v1269_v63, 0.0 }
 0x13c   : > { %v1858_v11 = vpop.f32.mrb[26].mxu1  ;;  %v1732_v12 = vpack.c.bf16 %v1298_v6, %v1298_v6  ;;  %v1299_v13 = vmax.f32 %v1267_v8, 0.0  ;;  %v1891_v14 = vpop.f32.mrb[24].mxu0 }
 0x13d   : > { %v842_v15 = vpop.f32.mrb[27].mxu1  ;;  %1461 = vst.msk [vmem:[%s2313_s27 + $0x58] sm:$0xf] %vm1438_vm2, %v1734_v10  ;;  %v1735_v16 = vpack.c.bf16 %v1301_v1, %v1301_v1  ;;  %v1923_v2 = vadd.f32 %v1891_v14, %v1857_v0  ;;  %v1176_v17 = vpop.f32.mrb[25].mxu0 }
 0x13e   : > { %1459 = vst.msk [vmem:[%s2313_s27 + $0x50] sm:$0xf] %vm1438_vm2, %v1732_v12  ;;  %v1733_v18 = vpack.c.bf16 %v1299_v13, %v1299_v13  ;;  %v1924_v3 = vadd.f32 %v1176_v17, %v839_v9  ;;  %v1892_v19 = vpop.f32.mrb[26].mxu0 }
 0x13f   : > { %1462 = vst.msk [vmem:[%s2313_s27 + $0x5c] sm:$0xf] %vm1438_vm2, %v1735_v16  ;;  %v1272_v20 = vadd.f32 %v1923_v2, %v2305_v7  ;;  %v1925_v21 = vadd.f32 %v1892_v19, %v1858_v11  ;;  %v1179_v22 = vpop.f32.mrb[27].mxu0 }
 0x140   : > { %1460 = vst.msk [vmem:[%s2313_s27 + $0x54] sm:$0xf] %vm1438_vm2, %v1733_v18  ;;  %v1270_v4 = vadd.f32 %v1924_v3, %v2305_v7  ;;  %v1926_v23 = vadd.f32 %v1179_v22, %v842_v15 }
 0x141   : > { %v1304_v24 = vmax.f32 %v1272_v20, 0.0  ;;  %v1273_v25 = vadd.f32 %v1925_v21, %v2305_v7 }
 0x142   : > { %v1861_v26 = vpop.f32.mrb[28].mxu1  ;;  %v1302_v27 = vmax.f32 %v1270_v4, 0.0  ;;  %v1271_v5 = vadd.f32 %v1926_v23, %v2305_v7 }
 0x143   : > { %v855_v28 = vpop.f32.mrb[29].mxu1  ;;  %v1738_v29 = vpack.c.bf16 %v1304_v24, %v1304_v24  ;;  %v1305_v30 = vmax.f32 %v1273_v25, 0.0 }
 0x144   : > { %v1862_v31 = vpop.f32.mrb[30].mxu1  ;;  %v1736_v32 = vpack.c.bf16 %v1302_v27, %v1302_v27  ;;  %v1303_v33 = vmax.f32 %v1271_v5, 0.0  ;;  %v1895_v34 = vpop.f32.mrb[28].mxu0 }
 0x145   : > { %v858_v35 = vpop.f32.mrb[31].mxu1  ;;  %1465 = vst.msk [vmem:[%s2313_s27 + $0x68] sm:$0xf] %vm1438_vm2, %v1738_v29  ;;  %v1739_v36 = vpack.c.bf16 %v1305_v30, %v1305_v30  ;;  %v1927_v37 = vadd.f32 %v1895_v34, %v1861_v26  ;;  %v1192_v38 = vpop.f32.mrb[29].mxu0 }
 0x146   : > { %1463 = vst.msk [vmem:[%s2313_s27 + $0x60] sm:$0xf] %vm1438_vm2, %v1736_v32  ;;  %v1737_v39 = vpack.c.bf16 %v1303_v33, %v1303_v33  ;;  %v1928_v40 = vadd.f32 %v1192_v38, %v855_v28  ;;  %v1896_v41 = vpop.f32.mrb[30].mxu0 }
 0x147   : > { %1466 = vst.msk [vmem:[%s2313_s27 + $0x6c] sm:$0xf] %vm1438_vm2, %v1739_v36  ;;  %v1276_v42 = vadd.f32 %v1927_v37, %v2305_v7  ;;  %v1929_v43 = vadd.f32 %v1896_v41, %v1862_v31  ;;  %v1195_v44 = vpop.f32.mrb[31].mxu0 }
 0x148   : > { %1464 = vst.msk [vmem:[%s2313_s27 + $0x64] sm:$0xf] %vm1438_vm2, %v1737_v39  ;;  %v1274_v45 = vadd.f32 %v1928_v40, %v2305_v7  ;;  %v1930_v46 = vadd.f32 %v1195_v44, %v858_v35 }
 0x149   : > { %v1308_v47 = vmax.f32 %v1276_v42, 0.0  ;;  %v1277_v48 = vadd.f32 %v1929_v43, %v2305_v7 }
 0x14a   : > { %v1306_v49 = vmax.f32 %v1274_v45, 0.0  ;;  %v1275_v50 = vadd.f32 %v1930_v46, %v2305_v7 }
 0x14b   : > { %v1742_v51 = vpack.c.bf16 %v1308_v47, %v1308_v47  ;;  %v1309_v52 = vmax.f32 %v1277_v48, 0.0 }
 0x14c   : > { %v1740_v53 = vpack.c.bf16 %v1306_v49, %v1306_v49  ;;  %v1307_v54 = vmax.f32 %v1275_v50, 0.0 }
 0x14d   : > { %1469 = vst.msk [vmem:[%s2313_s27 + $0x78] sm:$0xf] %vm1438_vm2, %v1742_v51  ;;  %v1743_v55 = vpack.c.bf16 %v1309_v52, %v1309_v52 }
 0x14e   : > { %1467 = vst.msk [vmem:[%s2313_s27 + $0x70] sm:$0xf] %vm1438_vm2, %v1740_v53  ;;  %v1741_v56 = vpack.c.bf16 %v1307_v54, %v1307_v54 }
 0x14f   : > { %1470 = vst.msk [vmem:[%s2313_s27 + $0x7c] sm:$0xf] %vm1438_vm2, %v1743_v55 }
 0x150   : > { %1468 = vst.msk [vmem:[%s2313_s27 + $0x74] sm:$0xf] %vm1438_vm2, %v1741_v56 }
 0x151 PF: > { %s13_s16 = sadd.s32 1, %s2097_s16   ;;  %s2434_s12 = smov %s2089_s14 }
 0x152   : > { %p10_p7 = scmp.ge.s32.totalorder %s13_s16, 6   ;;  %s2435_s13 = smov %s2093_s15 }
 0x153   : > { %s2436_s14 = smov %s2439_s17  ;;  %s2437_s15 = smov %s2443_s18 }
 0x154   :  { %12 = sbr.rel (!%p10_p7) target bundleno = 3 (0x3), region = 67 }

// kernel: _lambda_.5
= control target key start
LH: loop header
LB: loop body
LE: loop exit
PB: predicated region body
PF: predicated region fallthrough
CT: control target
= control target key end

     0   :  { %s1181_s12 = smov 0   ;;  %s1183_s13 = smov 0   ;;  %s1345_s0 = inlined_call_operand.vmem [shape: bf16[2,160,96], index: 0, kind: input, shape index: {}]   ;;  %s1346_s1 = inlined_call_operand.vmem [shape: bf16[3,96,64], index: 1, kind: input, shape index: {}]   ;;  %s1347_s2 = inlined_call_operand.vmem [shape: f32[1,64], index: 2, kind: input, shape index: {}]   ;;  %s1348_s3 = inlined_call_operand.vmem [shape: bf16[2,128,64], index: 3, kind: output, shape index: {}]  }
   0x1   :  { %s1185_s14 = smov 0   ;;  %s1187_s15 = smov 0  }
   0x2   :  { %s1189_s16 = smov 0  }
   0x3 LB: > { %s22_s17 = sadd.s32 1, %s1151_s14  ;;  %s25_s18 = sadd.s32 1, %s1155_s15  ;;  %s1159_s16 = sphi %s1189_s16, %s13_s16   ;;  %s1155_s15 = sphi %s1187_s15, %s1352_s15   ;;  %s1151_s14 = sphi %s1185_s14, %s1351_s14   ;;  %s1147_s13 = sphi %s1183_s13, %s1350_s13   ;;  %s1143_s12 = sphi %s1181_s12, %s1349_s12  }
   0x4   : > { %p23_p0 = scmp.ge.s32.totalorder %s22_s17, 2  ;;  %p838_p1 = scmp.ge.s32.totalorder %s1159_s16, 1 }
   0x5   : > { %p151_p2 = scmp.lt.s32.totalorder %s1159_s16, 5 }
   0x6   : > { %s1354_s17 = smov (%p23_p0, %s22_s17), 0  ;;  %s1356_s18 = smov (!%p23_p0, %s25_s18), %s1155_s15 }
   0x7   : > { %p152_p3 = pnand %p838_p1, %p151_p2  ;;  %p27_p4 = scmp.ge.s32.totalorder %s1356_s18, 2 }
   0x8   : > { %v1091_v0 = vld [vmem:[%s1346_s1 + $0x30] sm:$0xff] (!%p152_p3)   ;;  %p179_p5 = scmp.lt.s32.totalorder (!%p152_p3), %s1147_s13, 1  ;;  %v1092_v1 = vld [vmem:[%s1346_s1] sm:$0xff] (!%p152_p3)   ;;  %s1220_s23 = sshll.u32 (!%p152_p3), %s1143_s12, 6  ;;  %v1093_v2 = vld [vmem:[%s1346_s1 + $0x38] sm:$0xff] (!%p152_p3)   ;;  %vm302_vm0 = vcmask (!%p152_p3), 785408  }
   0x9   : > { %s1358_s18 = smov (%p27_p4, %s1356_s18), 0  ;;  %155 = sbr.rel (%p152_p3) target bundleno = 282 (0x11a), region = 32 }
   0xa   : > { %962 = vmatprep.subr.bf16.mxu1 (!%p152_p3), %v1091_v0  ;;  %982 = vmatprep.subr.bf16.mxu0 (!%p152_p3), %v1092_v1  ;;  %v1094_v3 = vld [vmem:[%s1346_s1 + $0x8] sm:$0xff] (!%p152_p3)   ;;  %s220_s28 = sadd.s32 (!%p152_p3), 16, %s1220_s23  ;;  %v1095_v4 = vld [vmem:[%s1346_s1 + $0x40] sm:$0xff] (!%p152_p3)   ;;  %v1096_v5 = vld [vmem:[%s1346_s1 + $0x10] sm:$0xff] (!%p152_p3)   ;;  %s196_s27 = sshra.s32 (!%p152_p3), %s1220_s23, 3  ;;  %vm735_vm1 = vcmask (!%p152_p3), 519168  }
   0xb   : > { %963 = vmatpush3.bf16.msra.mxu1 (!%p152_p3), %v1091_v0  ;;  %983 = vmatpush3.bf16.msra.mxu0 (!%p152_p3), %v1092_v1  ;;  %s221_s10 = sshra.s32 (!%p152_p3), %s220_s28, 3  ;;  %v1097_v6 = vld [vmem:[%s1346_s1 + $0x48] sm:$0xff] (!%p152_p3)   ;;  %v1098_v7 = vld [vmem:[%s1346_s1 + $0x18] sm:$0xff] (!%p152_p3)   ;;  %v1099_v8 = vld [vmem:[%s1346_s1 + $0x50] sm:$0xff] (!%p152_p3)   ;;  %s844_s30 = sshll.u32 (!%p152_p3), %s196_s27, 2 }
   0xc   : > { %964 = vmatprep.subr.bf16.mxu1 (!%p152_p3), %v1093_v2  ;;  %984 = vmatprep.subr.bf16.mxu0 (!%p152_p3), %v1094_v3  ;;  %s845_s11 = sshll.u32 (!%p152_p3), %s221_s10, 2  ;;  %v1100_v10 = vld [vmem:[%s1346_s1 + $0x20] sm:$0xff] (!%p152_p3)   ;;  %v1101_v12 = vld [vmem:[%s1346_s1 + $0x58] sm:$0xff] (!%p152_p3)   ;;  %s513_s7 = sadd.s32 (!%p152_p3), 32, %s1220_s23  ;;  %v1102_v13 = vld [vmem:[%s1346_s1 + $0x28] sm:$0xff] (!%p152_p3)  }
   0xd   : > { %v1106_v14 = vld [vmem:[%s1346_s1 + $0x60] sm:$0xff] (!%p152_p3)   ;;  %v1108_v17 = vld [vmem:[%s1346_s1 + $0x68] sm:$0xff] (!%p152_p3)   ;;  %v1109_v20 = vld [vmem:[%s1346_s1 + $0x70] sm:$0xff] (!%p152_p3)   ;;  %s840_s5 = sshll.u32 (!%p152_p3), %s1143_s12, 3 }
   0xe   : > { %v1112_v23 = vld [vmem:[%s1346_s1 + $0x78] sm:$0xff] (!%p152_p3)   ;;  %v1115_v26 = vld [vmem:[%s1346_s1 + $0x80] sm:$0xff] (!%p152_p3)   ;;  %v1116_v27 = vld [vmem:[%s1346_s1 + $0x88] sm:$0xff] (!%p152_p3)   ;;  %p187_p6 = scmp.lt.s32.totalorder (!%p152_p3), %s840_s5, 15 }
   0xf   : > { %965 = vmatpush3.bf16.msra.mxu1 (!%p152_p3), %v1093_v2  ;;  %985 = vmatpush3.bf16.msra.mxu0 (!%p152_p3), %v1094_v3  ;;  %v913_v46 = vld [vmem:[%s1347_s2] ss:$0 sm:$0xff] (!%p152_p3) }
  0x10   : > { %s1360_s13 = smov (!%p179_p5, %s1147_s13), 1  ;;  %966 = vmatprep.subr.bf16.mxu1 %v1095_v4  ;;  %986 = vmatprep.subr.bf16.mxu0 %v1096_v5  ;;  %s1362_s5 = smov (!%p187_p6, %s840_s5), 15 }
  0x11   : > { %s1050_s4 = smul.u32 80, %s1360_s13  ;;  %s841_s6 = sshll.u32 %s1360_s13, 4 }
  0x13   : > { %s1241_s9 = scalar_lea.vmem %s1345_s0, %s1050_s4  ;;  %967 = vmatpush3.bf16.msra.mxu1 %v1095_v4  ;;  %987 = vmatpush3.bf16.msra.mxu0 %v1096_v5 }
  0x14   : > { %s1250_s24 = scalar_lea.vmem %s1241_s9, %s845_s11  ;;  %968 = vmatprep.subr.bf16.mxu1 %v1097_v6  ;;  %988 = vmatprep.subr.bf16.mxu0 %v1098_v7  ;;  %s1262_s4 = scalar_lea.vmem %s1241_s9, %s844_s30 }
  0x15   : > { %v1103_v9 = vld [vmem:[%s1250_s24] sm:$0xff]   ;;  %s514_s11 = sshra.s32 %s513_s7, 3  ;;  %v1104_v15 = vld [vmem:[%s1250_s24 + $0x8] sm:$0xff]   ;;  %v1110_v18 = vld [vmem:[%s1250_s24 + $0x10] sm:$0xff]   ;;  %s190_s7 = sadd.s32 %s841_s6, %s1362_s5 }
  0x16   : > { %974 = vmatprep.mubr.msk.bf16.mxu1 %vm302_vm0, %v1103_v9  ;;  %v1105_v11 = vld [vmem:[%s1262_s4] sm:$0xff]   ;;  %s886_s23 = sshll.u32 %s514_s11, 2  ;;  %v1107_v16 = vld [vmem:[%s1262_s4 + $0x8] sm:$0xff]   ;;  %v1111_v19 = vld [vmem:[%s1262_s4 + $0x10] sm:$0xff]   ;;  %s842_s11 = sshll.u32 %s190_s7, 2 }
  0x17   : > { %969 = vmatpush3.bf16.msra.mxu1 %v1097_v6  ;;  %989 = vmatpush3.bf16.msra.mxu0 %v1098_v7  ;;  %s1282_s25 = scalar_lea.vmem %s1241_s9, %s886_s23  ;;  %v1113_v21 = vld [vmem:[%s1250_s24 + $0x18] sm:$0xff]   ;;  %s192_s19 = scalar_lea.vmem %s1348_s3, %s842_s11 }
  0x18   : > { %970 = vmatprep.subr.bf16.mxu1 %v1099_v8  ;;  %990 = vmatprep.subr.bf16.mxu0 %v1100_v10  ;;  %v1114_v22 = vld [vmem:[%s1262_s4 + $0x18] sm:$0xff]   ;;  %v1117_v24 = vld [vmem:[%s1282_s25] sm:$0xff]   ;;  %v1118_v25 = vld [vmem:[%s1282_s25 + $0x10] sm:$0xff]  }
  0x19   : > { %994 = vmatprep.mubr.msk.bf16.mxu0 %vm302_vm0, %v1105_v11  ;;  %v1120_v28 = vld [vmem:[%s1282_s25 + $0x18] sm:$0xff]   ;;  %v1119_v29 = vld [vmem:[%s1282_s25 + $0x8] sm:$0xff]  }
  0x1b   : > { %971 = vmatpush3.bf16.msra.mxu1 %v1099_v8  ;;  %991 = vmatpush3.bf16.msra.mxu0 %v1100_v10 }
  0x1c   : > { %972 = vmatprep.subr.bf16.mxu1 %v1101_v12  ;;  %992 = vmatprep.subr.bf16.mxu0 %v1102_v13 }
  0x1f   : > { %973 = vmatpush3.bf16.msra.mxu1 %v1101_v12  ;;  %993 = vmatpush3.bf16.msra.mxu0 %v1102_v13 }
  0x20   : > { %1022 = vmatprep.subr.bf16.mxu1 %v1106_v14  ;;  %1002 = vmatprep.subr.bf16.mxu0 %v1106_v14 }
  0x22   : > { %975 = vmatmul.mubr.msk.bf16.vlgmr.msra.gmra.mrb[0].mxu1 %vm302_vm0, %v1104_v15  ;;  %995 = vmatmul.mubr.msk.bf16.vlgmr.msra.gmra.mrb[0].mxu0 %vm302_vm0, %v1107_v16 }
  0x23   : > { %1028 = vmatpush3.bf16.msra.mxu1 %v1106_v14  ;;  %1003 = vmatpush3.bf16.msra.mxu0 %v1106_v14 }
  0x24   : > { %1023 = vmatprep.subr.bf16.mxu1 %v1108_v17  ;;  %1004 = vmatprep.subr.bf16.mxu0 %v1108_v17 }
  0x25   : > { %978 = vmatprep.mubr.msk.bf16.mxu1 %vm302_vm0, %v1110_v18  ;;  %998 = vmatprep.mubr.msk.bf16.mxu0 %vm302_vm0, %v1111_v19 }
  0x27   : > { %1029 = vmatpush3.bf16.msra.mxu1 %v1108_v17  ;;  %1005 = vmatpush3.bf16.msra.mxu0 %v1108_v17 }
  0x28   : > { %1024 = vmatprep.subr.bf16.mxu1 %v1109_v20  ;;  %1006 = vmatprep.subr.bf16.mxu0 %v1109_v20 }
  0x2a   : > { %979 = vmatmul.mubr.msk.bf16.gmra.mrb[4].mxu1 %vm302_vm0, %v1113_v21  ;;  %999 = vmatmul.mubr.msk.bf16.gmra.mrb[4].mxu0 %vm302_vm0, %v1114_v22 }
  0x2b   : > { %1030 = vmatpush3.bf16.msra.mxu1 %v1109_v20  ;;  %1007 = vmatpush3.bf16.msra.mxu0 %v1109_v20 }
  0x2c   : > { %1025 = vmatprep.subr.bf16.mxu1 %v1112_v23  ;;  %1008 = vmatprep.subr.bf16.mxu0 %v1112_v23 }
  0x2d   : > { %1014 = vmatprep.mubr.msk.bf16.mxu0 %vm302_vm0, %v1117_v24  ;;  %1018 = vmatprep.mubr.msk.bf16.mxu1 %vm302_vm0, %v1118_v25 }
  0x2f   : > { %1031 = vmatpush3.bf16.msra.mxu1 %v1112_v23  ;;  %1009 = vmatpush3.bf16.msra.mxu0 %v1112_v23 }
  0x30   : > { %1026 = vmatprep.subr.bf16.mxu1 %v1115_v26  ;;  %1010 = vmatprep.subr.bf16.mxu0 %v1115_v26 }
  0x33   : > { %1032 = vmatpush3.bf16.msra.mxu1 %v1115_v26  ;;  %1011 = vmatpush3.bf16.msra.mxu0 %v1115_v26 }
  0x34   : > { %1027 = vmatprep.subr.bf16.mxu1 %v1116_v27  ;;  %1012 = vmatprep.subr.bf16.mxu0 %v1116_v27 }
  0x37   : > { %1033 = vmatpush3.bf16.msra.mxu1 %v1116_v27  ;;  %1013 = vmatpush3.bf16.msra.mxu0 %v1116_v27 }
  0x3a   : > { %1019 = vmatmul.mubr.msk.bf16.vlgmr.msra.gmra.mrb[8].mxu1 %vm302_vm0, %v1120_v28  ;;  %1015 = vmatmul.mubr.msk.bf16.vlgmr.msra.gmra.mrb[0].mxu0 %vm302_vm0, %v1119_v29 }
  0xf5   : > { %v976_v30 = vpop.f32.mrb[0].mxu1 }
  0xf6   : > { %v349_v31 = vpop.f32.mrb[1].mxu1 }
  0xf7   : > { %v977_v32 = vpop.f32.mrb[2].mxu1 }
  0xf8   : > { %v352_v33 = vpop.f32.mrb[3].mxu1 }
  0xfd   : > { %v980_v34 = vpop.f32.mrb[4].mxu1  ;;  %v1000_v35 = vpop.f32.mrb[4].mxu0 }
  0xfe   : > { %v365_v36 = vpop.f32.mrb[5].mxu1  ;;  %v507_v37 = vadd.f32 %v1000_v35, %v980_v34  ;;  %v498_v38 = vpop.f32.mrb[5].mxu0 }
  0xff   : > { %v981_v39 = vpop.f32.mrb[6].mxu1  ;;  %v499_v40 = vadd.f32 %v498_v38, %v365_v36  ;;  %v1001_v41 = vpop.f32.mrb[6].mxu0 }
 0x100   : > { %v368_v42 = vpop.f32.mrb[7].mxu1  ;;  %v510_v43 = vadd.f32 %v1001_v41, %v981_v39  ;;  %v501_v44 = vpop.f32.mrb[7].mxu0 }
 0x101   : > { %v502_v45 = vadd.f32 %v501_v44, %v368_v42 }
 0x10d   : > { %v1020_v47 = vpop.f32.mrb[8].mxu1  ;;  %v1016_v48 = vpop.f32.mrb[0].mxu0 }
 0x10e   : > { %v678_v49 = vadd.f32 %v1020_v47, %v507_v37  ;;  %v657_v50 = vpop.f32.mrb[9].mxu1  ;;  %v1034_v51 = vadd.f32 %v1016_v48, %v976_v30  ;;  %v641_v52 = vpop.f32.mrb[1].mxu0 }
 0x10f   : > { %v676_v53 = vadd.f32 %v657_v50, %v499_v40  ;;  %v1021_v54 = vpop.f32.mrb[10].mxu1  ;;  %v1035_v56 = vadd.f32 %v641_v52, %v349_v31  ;;  %v1017_v57 = vpop.f32.mrb[2].mxu0 }
 0x110   : > { %v693_v55 = vadd.f32 %v913_v46, %v678_v49  ;;  %v679_v58 = vadd.f32 %v1021_v54, %v510_v43  ;;  %v660_v59 = vpop.f32.mrb[11].mxu1  ;;  %v689_v60 = vadd.f32 %v1034_v51, %v913_v46  ;;  %v1036_v62 = vadd.f32 %v1017_v57, %v977_v32  ;;  %v644_v63 = vpop.f32.mrb[3].mxu0 }
 0x111   : > { %v691_v61 = vadd.f32 %v913_v46, %v676_v53  ;;  %v677_v0 = vadd.f32 %v660_v59, %v502_v45  ;;  %v687_v2 = vadd.f32 %v1035_v56, %v913_v46  ;;  %v1037_v4 = vadd.f32 %v644_v63, %v352_v33 }
 0x112   : > { %v701_v1 = vmax.f32 %v693_v55, 0.0  ;;  %v694_v3 = vadd.f32 %v913_v46, %v679_v58  ;;  %v697_v5 = vmax.f32 %v689_v60, 0.0  ;;  %v690_v7 = vadd.f32 %v1036_v62, %v913_v46 }
 0x113   : > { %v699_v6 = vmax.f32 %v691_v61, 0.0  ;;  %v692_v8 = vadd.f32 %v913_v46, %v677_v0  ;;  %v695_v10 = vmax.f32 %v687_v2, 0.0  ;;  %v688_v12 = vadd.f32 %v1037_v4, %v913_v46 }
 0x114   : > { %v930_v9 = vpack.c.bf16 %v701_v1, %v701_v1  ;;  %v702_v11 = vmax.f32 %v694_v3, 0.0  ;;  %v926_v13 = vpack.c.bf16 %v697_v5, %v697_v5  ;;  %v698_v15 = vmax.f32 %v690_v7, 0.0 }
 0x115   : > { %v928_v14 = vpack.c.bf16 %v699_v6, %v699_v6  ;;  %v700_v16 = vmax.f32 %v692_v8, 0.0  ;;  %v924_v17 = vpack.c.bf16 %v695_v10, %v695_v10  ;;  %v696_v19 = vmax.f32 %v688_v12, 0.0 }
 0x116   : > { %742 = vst.msk [vmem:[%s192_s19 + $0x18] sm:$0xf] %vm735_vm1, %v930_v9  ;;  %v931_v18 = vpack.c.bf16 %v702_v11, %v702_v11  ;;  %738 = vst.msk [vmem:[%s192_s19 + $0x8] sm:$0xf] %vm735_vm1, %v926_v13  ;;  %v927_v20 = vpack.c.bf16 %v698_v15, %v698_v15 }
 0x117   : > { %740 = vst.msk [vmem:[%s192_s19 + $0x10] sm:$0xf] %vm735_vm1, %v928_v14  ;;  %v929_v21 = vpack.c.bf16 %v700_v16, %v700_v16  ;;  %736 = vst.msk [vmem:[%s192_s19] sm:$0xf] %vm735_vm1, %v924_v17  ;;  %v925_v22 = vpack.c.bf16 %v696_v19, %v696_v19 }
 0x118   : > { %743 = vst.msk [vmem:[%s192_s19 + $0x1c] sm:$0xf] %vm735_vm1, %v931_v18  ;;  %739 = vst.msk [vmem:[%s192_s19 + $0xc] sm:$0xf] %vm735_vm1, %v927_v20 }
 0x119   : > { %741 = vst.msk [vmem:[%s192_s19 + $0x14] sm:$0xf] %vm735_vm1, %v929_v21  ;;  %737 = vst.msk [vmem:[%s192_s19 + $0x4] sm:$0xf] %vm735_vm1, %v925_v22 }
 0x11a PF: > { %s13_s16 = sadd.s32 1, %s1159_s16   ;;  %s1349_s12 = smov %s1151_s14 }
 0x11b   : > { %p10_p7 = scmp.ge.s32.totalorder %s13_s16, 6   ;;  %s1350_s13 = smov %s1155_s15 }
 0x11c   : > { %s1351_s14 = smov %s1354_s17  ;;  %s1352_s15 = smov %s1358_s18 }
 0x11d   :  { %12 = sbr.rel (!%p10_p7) target bundleno = 3 (0x3), region = 67 }

// kernel: _lambda_.7
= control target key start
LH: loop header
LB: loop body
LE: loop exit
PB: predicated region body
PF: predicated region fallthrough
CT: control target
= control target key end

     0   :  { %v497_v47 = vmov 1983009808   ;;  %v92_v49 = vlaneseq  ;;  %s737_s0 = inlined_call_operand.vmem [shape: f32[2,512], index: 0, kind: input, shape index: {}]   ;;  %s738_s1 = inlined_call_operand.vmem [shape: f32[512,128], index: 1, kind: input, shape index: {}]   ;;  %s739_s2 = inlined_call_operand.vmem [shape: f32[1,128], index: 2, kind: input, shape index: {}]   ;;  %s740_s3 = inlined_call_operand.hbm [shape: f32[2,8], index: 3, kind: output, shape index: {}]  }
   0x1   :  { %v32_v0 = vld [vmem:[%s738_s1 + $0x80] sm:$0xff]  ;;  %v33_v1 = vld [vmem:[%s738_s1 + $0x88] sm:$0xff]  ;;  %v34_v11 = vld [vmem:[%s738_s1 + $0x90] sm:$0xff]  ;;  %v90_v48 = vunpack.c.l.s4 %v497_v47 }
   0x2   :  { %v16_v2 = vld [vmem:[%s738_s1] sm:$0xff]  ;;  %v390_v3 = vpack.c.bf16 %v33_v1, %v32_v0  ;;  %v17_v4 = vld [vmem:[%s738_s1 + $0x8] sm:$0xff]  ;;  %v35_v13 = vld [vmem:[%s738_s1 + $0x98] sm:$0xff]  ;;  %v93_v0 = vshrl.u32 %v92_v49, 7 }
   0x3   :  { %v64_v5 = vld [vmem:[%s738_s1 + $0x180] sm:$0xff]  ;;  %v65_v6 = vld [vmem:[%s738_s1 + $0x188] sm:$0xff]  ;;  %v392_v7 = vpack.c.bf16 %v17_v4, %v16_v2  ;;  %v18_v14 = vld [vmem:[%s738_s1 + $0x10] sm:$0xff]  ;;  %v394_v16 = vpack.c.bf16 %v35_v13, %v34_v11  ;;  %v91_v63 = vunpack.c.0.s8 %v90_v48 }
   0x4   :  { %v422_v8 = vpack.c.bf16 %v65_v6, %v64_v5  ;;  %v48_v9 = vld [vmem:[%s738_s1 + $0x100] sm:$0xff]  ;;  %v49_v10 = vld [vmem:[%s738_s1 + $0x108] sm:$0xff]  ;;  %391 = vmatprep.subr.bf16.mxu0 %v390_v3  ;;  %v19_v15 = vld [vmem:[%s738_s1 + $0x18] sm:$0xff] }
   0x5   :  { %v424_v12 = vpack.c.bf16 %v49_v10, %v48_v9  ;;  %393 = vmatpush3.bf16.msra.mxu0 %v392_v7  ;;  %v396_v17 = vpack.c.bf16 %v19_v15, %v18_v14  ;;  %v66_v18 = vld [vmem:[%s738_s1 + $0x190] sm:$0xff]  ;;  %v67_v19 = vld [vmem:[%s738_s1 + $0x198] sm:$0xff]  ;;  %v36_v23 = vld [vmem:[%s738_s1 + $0xa0] sm:$0xff]  ;;  %v94_v13 = vsub.s32 %v91_v63, %v93_v0 }
   0x6   :  { %423 = vmatprep.subr.bf16.mxu1 %v422_v8  ;;  %v50_v20 = vld [vmem:[%s738_s1 + $0x110] sm:$0xff]  ;;  %v426_v21 = vpack.c.bf16 %v67_v19, %v66_v18  ;;  %v51_v22 = vld [vmem:[%s738_s1 + $0x118] sm:$0xff]  ;;  %v37_v24 = vld [vmem:[%s738_s1 + $0xa8] sm:$0xff]  ;;  %395 = vmatprep.subr.bf16.mxu0 %v394_v16 }
   0x7   :  { %425 = vmatpush3.bf16.msra.mxu1 %v424_v12  ;;  %v428_v25 = vpack.c.bf16 %v51_v22, %v50_v20  ;;  %v398_v26 = vpack.c.bf16 %v37_v24, %v36_v23  ;;  %v20_v27 = vld [vmem:[%s738_s1 + $0x20] sm:$0xff]  ;;  %v21_v28 = vld [vmem:[%s738_s1 + $0x28] sm:$0xff]  ;;  %v38_v35 = vld [vmem:[%s738_s1 + $0xb0] sm:$0xff] }
   0x8   :  { %v68_v29 = vld [vmem:[%s738_s1 + $0x1a0] sm:$0xff]  ;;  %427 = vmatprep.subr.bf16.mxu1 %v426_v21  ;;  %v69_v30 = vld [vmem:[%s738_s1 + $0x1a8] sm:$0xff]  ;;  %v400_v33 = vpack.c.bf16 %v21_v28, %v20_v27  ;;  %v39_v36 = vld [vmem:[%s738_s1 + $0xb8] sm:$0xff] }
   0x9   :  { %v52_v31 = vld [vmem:[%s738_s1 + $0x120] sm:$0xff]  ;;  %v53_v32 = vld [vmem:[%s738_s1 + $0x128] sm:$0xff]  ;;  %397 = vmatpush3.bf16.msra.mxu0 %v396_v17  ;;  %v430_v34 = vpack.c.bf16 %v69_v30, %v68_v29  ;;  %v22_v37 = vld [vmem:[%s738_s1 + $0x30] sm:$0xff]  ;;  %v402_v39 = vpack.c.bf16 %v39_v36, %v38_v35 }
   0xa   :  { %399 = vmatprep.subr.bf16.mxu0 %v398_v26  ;;  %v432_v38 = vpack.c.bf16 %v53_v32, %v52_v31  ;;  %v23_v40 = vld [vmem:[%s738_s1 + $0x38] sm:$0xff]  ;;  %v70_v41 = vld [vmem:[%s738_s1 + $0x1b0] sm:$0xff]  ;;  %v40_v46 = vld [vmem:[%s738_s1 + $0xc0] sm:$0xff] }
   0xb   :  { %429 = vmatpush3.bf16.msra.mxu1 %v428_v25  ;;  %v71_v42 = vld [vmem:[%s738_s1 + $0x1b8] sm:$0xff]  ;;  %v54_v44 = vld [vmem:[%s738_s1 + $0x130] sm:$0xff]  ;;  %v41_v50 = vld [vmem:[%s738_s1 + $0xc8] sm:$0xff]  ;;  %v404_v51 = vpack.c.bf16 %v23_v40, %v22_v37 }
   0xc   :  { %431 = vmatprep.subr.bf16.mxu1 %v430_v34  ;;  %v434_v43 = vpack.c.bf16 %v71_v42, %v70_v41  ;;  %v55_v45 = vld [vmem:[%s738_s1 + $0x138] sm:$0xff]  ;;  %v72_v52 = vld [vmem:[%s738_s1 + $0x1c0] sm:$0xff]  ;;  %v73_v53 = vld [vmem:[%s738_s1 + $0x1c8] sm:$0xff]  ;;  %v406_v55 = vpack.c.bf16 %v41_v50, %v40_v46 }
   0xd   :  { %401 = vmatpush3.bf16.msra.mxu0 %v400_v33  ;;  %v436_v54 = vpack.c.bf16 %v55_v45, %v54_v44  ;;  %v24_v56 = vld [vmem:[%s738_s1 + $0x40] sm:$0xff]  ;;  %v25_v57 = vld [vmem:[%s738_s1 + $0x48] sm:$0xff]  ;;  %v438_v59 = vpack.c.bf16 %v73_v53, %v72_v52  ;;  %v42_v61 = vld [vmem:[%s738_s1 + $0xd0] sm:$0xff] }
   0xe   :  { %403 = vmatprep.subr.bf16.mxu0 %v402_v39  ;;  %v56_v58 = vld [vmem:[%s738_s1 + $0x140] sm:$0xff]  ;;  %v57_v60 = vld [vmem:[%s738_s1 + $0x148] sm:$0xff]  ;;  %v43_v62 = vld [vmem:[%s738_s1 + $0xd8] sm:$0xff]  ;;  %v408_v3 = vpack.c.bf16 %v25_v57, %v24_v56 }
   0xf   :  { %433 = vmatpush3.bf16.msra.mxu1 %v432_v38  ;;  %v74_v1 = vld [vmem:[%s738_s1 + $0x1d0] sm:$0xff]  ;;  %v75_v2 = vld [vmem:[%s738_s1 + $0x1d8] sm:$0xff]  ;;  %v440_v4 = vpack.c.bf16 %v57_v60, %v56_v58  ;;  %v410_v5 = vpack.c.bf16 %v43_v62, %v42_v61  ;;  %v44_v11 = vld [vmem:[%s738_s1 + $0xe0] sm:$0xff] }
  0x10   :  { %435 = vmatprep.subr.bf16.mxu1 %v434_v43  ;;  %v26_v6 = vld [vmem:[%s738_s1 + $0x50] sm:$0xff]  ;;  %v27_v7 = vld [vmem:[%s738_s1 + $0x58] sm:$0xff]  ;;  %v442_v9 = vpack.c.bf16 %v75_v2, %v74_v1  ;;  %v45_v12 = vld [vmem:[%s738_s1 + $0xe8] sm:$0xff] }
  0x11   :  { %405 = vmatpush3.bf16.msra.mxu0 %v404_v51  ;;  %v58_v8 = vld [vmem:[%s738_s1 + $0x150] sm:$0xff]  ;;  %v59_v10 = vld [vmem:[%s738_s1 + $0x158] sm:$0xff]  ;;  %v76_v14 = vld [vmem:[%s738_s1 + $0x1e0] sm:$0xff]  ;;  %v412_v16 = vpack.c.bf16 %v27_v7, %v26_v6  ;;  %v414_v20 = vpack.c.bf16 %v45_v12, %v44_v11 }
  0x12   :  { %407 = vmatprep.subr.bf16.mxu0 %v406_v55  ;;  %v77_v15 = vld [vmem:[%s738_s1 + $0x1e8] sm:$0xff]  ;;  %v28_v17 = vld [vmem:[%s738_s1 + $0x60] sm:$0xff]  ;;  %v444_v19 = vpack.c.bf16 %v59_v10, %v58_v8 }
  0x13   :  { %437 = vmatpush3.bf16.msra.mxu1 %v436_v54  ;;  %v29_v18 = vld [vmem:[%s738_s1 + $0x68] sm:$0xff]  ;;  %v60_v21 = vld [vmem:[%s738_s1 + $0x160] sm:$0xff] }
  0x14   :  { %439 = vmatprep.subr.bf16.mxu1 %v438_v59  ;;  %v15_v22 = vld [vmem:[%s737_s0] sm:$0xff] }
  0x15   :  { %409 = vmatpush3.bf16.msra.mxu0 %v408_v3 }
  0x16   :  { %411 = vmatprep.subr.bf16.mxu0 %v410_v5 }
  0x17   :  { %441 = vmatpush3.bf16.msra.mxu1 %v440_v4 }
  0x18   :  { %8 = vsyncpa [#allocation3], 0  ;;  %443 = vmatprep.subr.bf16.mxu1 %v442_v9  ;;  %v446_v23 = vpack.c.bf16 %v77_v15, %v76_v14  ;;  %v61_v24 = vld [vmem:[%s738_s1 + $0x168] sm:$0xff]  ;;  %v46_v25 = vld [vmem:[%s738_s1 + $0xf0] sm:$0xff]  ;;  %v95_v27 = vrot.slane %v15_v22, %v94_v13  ;;  %v88_v28 = vcombine.high %v15_v22, %v15_v22  ;;  %v416_v31 = vpack.c.bf16 %v29_v18, %v28_v17  ;;  %s504_s8 = smov 104   ;;  %s505_s9 = smov 124  }
  0x19   :  { %v47_v26 = vld [vmem:[%s738_s1 + $0xf8] sm:$0xff]  ;;  %v78_v29 = vld [vmem:[%s738_s1 + $0x1f0] sm:$0xff]  ;;  %413 = vmatpush3.bf16.msra.mxu0 %v412_v16  ;;  %v448_v34 = vpack.c.bf16 %v61_v24, %v60_v21  ;;  %v319_v45 = vld [vmem:[%s739_s2] ss:$0 sm:$0xff]  ;;  %vm249_vm0 = vcmask 25600   ;;  %v498_v59 = vmov 3  }
  0x1a   :  { %v79_v30 = vld [vmem:[%s738_s1 + $0x1f8] sm:$0xff]  ;;  %v103_v32 = vcombine.high %v95_v27, %v95_v27  ;;  %v102_v33 = vrot.slane %v88_v28, %v94_v13  ;;  %415 = vmatprep.subr.bf16.mxu0 %v414_v20  ;;  %v418_v35 = vpack.c.bf16 %v47_v26, %v46_v25  ;;  %v30_v36 = vld [vmem:[%s738_s1 + $0x70] sm:$0xff]  ;;  %466 = vset.pattern.permute.xlu0 %v498_v59  ;;  %v499_v60 = vmov 1   ;;  %s503_s2 = smov 112   ;;  %s506_s10 = smov [#allocation2]  }
  0x1b   :  { %445 = vmatpush3.bf16.msra.mxu1 %v444_v19  ;;  %v31_v37 = vld [vmem:[%s738_s1 + $0x78] sm:$0xff]  ;;  %v450_v38 = vpack.c.bf16 %v79_v30, %v78_v29  ;;  %v62_v39 = vld [vmem:[%s738_s1 + $0x170] sm:$0xff]  ;;  %464 = vset.pattern.permute.xlu1 %v499_v60  ;;  %v500_v0 = vmov 2   ;;  %v501_v1 = vmov 0   ;;  %s311_s11 = sshll.u32 %s506_s10, 4  ;;  %vm303_vm1 = vcmask 58368   ;;  %s312_s11 = int_to_ptr.vmem [resolvable:$true] %s311_s11 }
  0x1c   :  { %447 = vmatprep.subr.bf16.mxu1 %v446_v23  ;;  %v63_v40 = vld [vmem:[%s738_s1 + $0x178] sm:$0xff]  ;;  %173 = vmatprep.mubr.f32.mxu0 %v103_v32  ;;  %v104_v41 = vcombine.high %v102_v33, %v102_v33  ;;  %v420_v42 = vpack.c.bf16 %v31_v37, %v30_v36  ;;  %s502_s1 = smov 120   ;;  %s473_s12 = scalar_lea.vmem %s312_s11, 32 }
  0x1d   :  { %417 = vmatpush3.bf16.msra.mxu0 %v416_v31  ;;  %v452_v43 = vpack.c.bf16 %v63_v40, %v62_v39  ;;  %p474_p0 = scmp.ne.s32.totalorder %s312_s11, %s473_s12  ;;  %p478_p1 = scmp.lt.s32.totalorder %s312_s11, %s312_s11 }
  0x1e   :  { %243 = vmatprep.mubr.f32.mxu1 %v104_v41  ;;  %419 = vmatprep.subr.bf16.mxu0 %v418_v35  ;;  %p479_p2 = scmp.lt.s32.totalorder %s473_s12, %s473_s12 }
  0x1f   :  { %449 = vmatpush3.bf16.msra.mxu1 %v448_v34 }
  0x20   :  { %451 = vmatprep.subr.bf16.mxu1 %v450_v38  ;;  %p480_p3 = por %p479_p2, %p478_p1 }
  0x21   :  { %421 = vmatpush3.bf16.msra.mxu0 %v420_v42 }
  0x22   :  { %p481_p4 = pnand %p480_p3, %p474_p0 }
  0x23   :  { %453 = vmatpush3.bf16.msra.mxu1 %v452_v43 }
  0x24   :  { %174 = vmatmul.mubr.f32.vlgmr.msra.gmra.mrb[0].mxu0 %v95_v27 }
  0x26   :  { %244 = vmatmul.mubr.f32.vlgmr.msra.gmra.mrb[0].mxu1 %v102_v33 }
  0xf7   :  { %v352_v44 = vpop.f32.mrb[0].mxu0 }
  0xf8   :  { %v353_v46 = vpop.f32.mrb[1].mxu0 }
  0xf9   :  { %v387_v47 = vpop.f32.mrb[0].mxu1  ;;  %v354_v48 = vadd.f32 %v353_v46, %v352_v44 }
  0xfa   :  { %v388_v49 = vpop.f32.mrb[1].mxu1 }
  0xfb   :  { %v389_v50 = vadd.f32 %v388_v49, %v387_v47  ;;  %v176_v51 = vadd.f32 %v354_v48, %v319_v45 }
  0xfd   :  { %v246_v52 = vadd.f32 %v389_v50, %v176_v51 }
  0xff   :  { %v250_v53 = vsel %vm249_vm0, %v246_v52, -inf  ;;  %v261_v2 = vmax.f32 %v246_v52, 0.0 }
 0x100   :  { %251 = vmax.xlane.f32.xlu0 %v250_v53 }
 0x18d   :  { %v252_v54 = vpop.xlane.xlu0 %251 }
 0x18e   :  { %v253_v55 = vsub.f32 %v246_v52, %v252_v54 }
 0x190   :  { %v254_v56 = vmul.f32 1.442695, %v253_v55 }
 0x192   :  { %469 = vpow2.f32 %v254_v56 }
 0x19c   :  { %v470_v57 = vpop.eup %469 }
 0x19d   :  { %v256_v58 = vsel %vm249_vm0, %v470_v57, 0.0 }
 0x19e   :  { %257 = vadd.xlane.f32.xlu0 %v256_v58 }
 0x22b   :  { %v258_v61 = vpop.xlane.xlu0 %257 }
 0x22c   :  { %471 = vrcp.f32 %v258_v61 }
 0x236   :  { %v472_v62 = vpop.eup %471 }
 0x237   :  { %v260_v63 = vmul.f32 %v472_v62, %v470_v57 }
 0x239   :  { %290 = vperm.xlu0 %466, %v260_v63   ;;  %270 = vperm.xlu1 %464, %v260_v63  }
 0x23d   :  { %465 = vset.pattern.permute.xlu1 %v500_v0 }
 0x23e   :  { %280 = vperm.xlu1 %465, %v260_v63  }
 0x242   :  { %467 = vset.pattern.permute.xlu1 %v501_v1 }
 0x243   :  { %264 = vperm.xlu1 %467, %v260_v63  }
 0x2b8   :  { %v271_v3 = vpop.permute.xlu1 %270  ;;  %v291_v7 = vpop.permute.xlu0 %290 }
 0x2b9   :  { %v273_v4 = vmul.f32 %v271_v3, %v261_v2  ;;  %v293_v8 = vmul.f32 %v291_v7, %v261_v2 }
 0x2bb   :  { %275 = vrot.lane.b32.xlu1 %v273_v4, %s502_s1 }
 0x2bd   :  { %v281_v5 = vpop.permute.xlu1 %280 }
 0x2be   :  { %v283_v6 = vmul.f32 %v281_v5, %v261_v2 }
 0x2c0   :  { %285 = vrot.lane.b32.xlu1 %v283_v6, %s503_s2 }
 0x2c2   :  { %v265_v9 = vpop.permute.xlu1 %264 }
 0x2c3   :  { %v267_v11 = vmul.f32 %v265_v9, %v261_v2 }
 0x2c4   :  { %295 = vrot.lane.b32.xlu1 %v293_v8, %s504_s8 }
 0x32d   :  { %v276_v10 = vpop.permute.xlu1 %275 }
 0x32e   :  { %v278_v13 = vadd.f32 %v276_v10, %v267_v11 }
 0x332   :  { %v286_v12 = vpop.permute.xlu1 %285 }
 0x333   :  { %v288_v14 = vadd.f32 %v286_v12, %v278_v13 }
 0x336   :  { %v296_v15 = vpop.permute.xlu1 %295 }
 0x337   :  { %v298_v16 = vadd.f32 %v296_v15, %v288_v14 }
 0x339   :  { %300 = vrot.lane.b32.xlu1 %v298_v16, %s505_s9 }
 0x3ab   :  { %v301_v17 = vpop.permute.xlu1 %300 }
 0x3ac   :  { %304 = vst.msk [vmem:[#allocation2] sm:$0x3] %vm303_vm1, %v301_v17 }
 0x3ad   :  { %484 = shalt.err (!%p481_p4)
}
 0x3ae   :  { %s485_s15 = scalar_lea.hbm %s740_s3, 32 }
 0x3af   :  { %p486_p5 = scmp.ne.s32.totalorder %s740_s3, %s485_s15  ;;  %p489_p6 = scmp.lt.u32.totalorder %s485_s15, %s740_s3 }
 0x3b1   :  { %p491_p7 = pnand %p489_p6, %p486_p5 }
 0x3b3   :  { %494 = shalt.err (!%p491_p7)
}
 0x3b4   :  { %314 = dma.vmem_to_hbm [thread:$0]  %s312_s11, 32, %s740_s3, [#allocation3]  }
 0x3b5   :  { %495 = dma.done.wait [#allocation3], 32  }
 0x3b6   :  { %496 = vsyncadd [#allocation3], 4294967264 }
 0x3b7   :  { %318 = vsyncpa [#allocation3], 1 }

// kernel: _lambda_.6
= control target key start
LH: loop header
LB: loop body
LE: loop exit
PB: predicated region body
PF: predicated region fallthrough
CT: control target
= control target key end

     0   :  { %s2402_s12 = smov 0   ;;  %s2404_s13 = smov 0   ;;  %s2971_s0 = inlined_call_operand.vmem [shape: bf16[2,96,192], index: 0, kind: input, shape index: {}]   ;;  %s2972_s1 = inlined_call_operand.vmem [shape: bf16[3,192,512], index: 1, kind: input, shape index: {}]   ;;  %s2973_s2 = inlined_call_operand.vmem [shape: f32[1,512], index: 2, kind: input, shape index: {}]   ;;  %s2974_s3 = inlined_call_operand.vmem [shape: f32[2,1,512], index: 3, kind: output, shape index: {}]  }
   0x1   :  { %s2406_s14 = smov 0   ;;  %s2408_s15 = smov 0  }
   0x2   :  { %s2410_s16 = smov 0  }
   0x3 LB: > { %s22_s17 = sadd.s32 1, %s2370_s14  ;;  %s25_s18 = sadd.s32 1, %s2374_s15  ;;  %s2378_s16 = sphi %s2410_s16, %s13_s16   ;;  %s2374_s15 = sphi %s2408_s15, %s2982_s15   ;;  %s2370_s14 = sphi %s2406_s14, %s2981_s14   ;;  %s2366_s13 = sphi %s2404_s13, %s2980_s13   ;;  %s2362_s12 = sphi %s2402_s12, %s2979_s12  }
   0x4   : > { %p23_p0 = scmp.ge.s32.totalorder %s22_s17, 2  ;;  %p1782_p1 = scmp.ge.s32.totalorder %s2378_s16, 1 }
   0x5   : > { %p149_p2 = scmp.lt.s32.totalorder %s2378_s16, 5 }
   0x6   : > { %s2984_s17 = smov (%p23_p0, %s22_s17), 0  ;;  %s2986_s18 = smov (!%p23_p0, %s25_s18), %s2374_s15 }
   0x7   : > { %p150_p3 = pnand %p1782_p1, %p149_p2  ;;  %p27_p4 = scmp.ge.s32.totalorder %s2986_s18, 2 }
   0x8   : > { %p172_p5 = scmp.lt.s32.totalorder (!%p150_p3), %s2366_s13, 1  ;;  %p1785_p6 = scmp.ne.s32.totalorder (!%p150_p3), %s2362_s12, 0 }
   0x9   : > { %s2988_s18 = smov (%p27_p4, %s2986_s18), 0  ;;  %153 = sbr.rel (%p150_p3) target bundleno = 431 (0x1af), region = 32 }
  0x10   : > { %s2990_s13 = smov (!%p172_p5, %s2366_s13), 1  ;;  %185 = sbr.rel (%p1785_p6) target bundleno = 23 (0x17), region = 36 }
  0x11   : > { %s2063_s19 = smul.u32 96, %s2990_s13  ;;  %s1784_s20 = sshll.u32 %s2990_s13, 2  ;;  %v186_v0 = vlaneseq (!%p1785_p6)  ;;  %v2380_v1 = vmov (!%p1785_p6), 0.0  }
  0x12   : > { %s2437_s23 = scalar_lea.vmem %s2974_s3, %s1784_s20 }
  0x13   : > { %s2442_s26 = scalar_lea.vmem %s2971_s0, %s2063_s19  ;;  %vm188_vm0 = vcmp.lt.s32.totalorder (!%p1785_p6), %v186_v0, 512 }
  0x14   : > { %190 = vst.msk [vmem:[#allocation2] sm:$0xf] (!%p1785_p6), %vm188_vm0, %v2380_v1 }
  0x17 PF: > { %v2106_v2 = vld [vmem:[%s2972_s1 + $0x184] ss:$16 sps:$4 sm:$0xff]   ;;  %v2108_v3 = vld [vmem:[%s2972_s1 + $0x18c] ss:$16 sps:$4 sm:$0xff]   ;;  %v2110_v4 = vld [vmem:[%s2972_s1 + $0x180] ss:$16 sps:$4 sm:$0xff]  }
  0x18   : > { %573 = vmatprep.subr.bf16.mxu0 %v2106_v2  ;;  %v2111_v5 = vld [vmem:[%s2972_s1 + $0x188] ss:$16 sps:$4 sm:$0xff]   ;;  %626 = vmatprep.subr.bf16.mxu1 %v2108_v3  ;;  %v2112_v6 = vld [vmem:[%s2972_s1 + $0x1a4] ss:$16 sps:$4 sm:$0xff]   ;;  %v2114_v7 = vld [vmem:[%s2972_s1 + $0x1ac] ss:$16 sps:$4 sm:$0xff]  }
  0x19   : > { %574 = vmatpush1.bf16.msra.mxu0 %v2110_v4  ;;  %627 = vmatpush1.bf16.msra.mxu1 %v2111_v5  ;;  %v2116_v8 = vld [vmem:[%s2972_s1 + $0x1a0] ss:$16 sps:$4 sm:$0xff]   ;;  %v2117_v9 = vld [vmem:[%s2972_s1 + $0x1a8] ss:$16 sps:$4 sm:$0xff]   ;;  %v2118_v10 = vld [vmem:[%s2972_s1 + $0x1c4] ss:$16 sps:$4 sm:$0xff]  }
  0x1a   : > { %575 = vmatprep.subr.bf16.mxu0 %v2112_v6  ;;  %628 = vmatprep.subr.bf16.mxu1 %v2114_v7  ;;  %v2120_v11 = vld [vmem:[%s2972_s1 + $0x1cc] ss:$16 sps:$4 sm:$0xff]   ;;  %v2122_v12 = vld [vmem:[%s2972_s1 + $0x1c0] ss:$16 sps:$4 sm:$0xff]   ;;  %v2123_v13 = vld [vmem:[%s2972_s1 + $0x1c8] ss:$16 sps:$4 sm:$0xff]  }
  0x1b   : > { %v2124_v14 = vld [vmem:[%s2972_s1 + $0x1e4] ss:$16 sps:$4 sm:$0xff]   ;;  %v2126_v15 = vld [vmem:[%s2972_s1 + $0x1ec] ss:$16 sps:$4 sm:$0xff]   ;;  %v2128_v16 = vld [vmem:[%s2972_s1 + $0x1e0] ss:$16 sps:$4 sm:$0xff]  }
  0x1c   : > { %v2129_v17 = vld [vmem:[%s2972_s1 + $0x1e8] ss:$16 sps:$4 sm:$0xff]   ;;  %v2130_v18 = vld [vmem:[%s2972_s1 + $0x204] ss:$16 sps:$4 sm:$0xff]   ;;  %v2132_v19 = vld [vmem:[%s2972_s1 + $0x20c] ss:$16 sps:$4 sm:$0xff]  }
  0x1d   : > { %576 = vmatpush1.bf16.msra.mxu0 %v2116_v8  ;;  %629 = vmatpush1.bf16.msra.mxu1 %v2117_v9  ;;  %v2134_v20 = vld [vmem:[%s2972_s1 + $0x200] ss:$16 sps:$4 sm:$0xff]   ;;  %v2135_v21 = vld [vmem:[%s2972_s1 + $0x208] ss:$16 sps:$4 sm:$0xff]   ;;  %v2136_v22 = vld [vmem:[%s2972_s1 + $0x224] ss:$16 sps:$4 sm:$0xff]  }
  0x1e   : > { %577 = vmatprep.subr.bf16.mxu0 %v2118_v10  ;;  %630 = vmatprep.subr.bf16.mxu1 %v2120_v11  ;;  %v2138_v23 = vld [vmem:[%s2972_s1 + $0x22c] ss:$16 sps:$4 sm:$0xff]   ;;  %s2512_s6 = sshll.u32 %s2362_s12, 5  ;;  %v2140_v24 = vld [vmem:[%s2972_s1 + $0x220] ss:$16 sps:$4 sm:$0xff]   ;;  %vm566_vm1 = vcmask 523264  }
  0x1f   : > { %v2141_v25 = vld [vmem:[%s2972_s1 + $0x228] ss:$16 sps:$4 sm:$0xff]   ;;  %v2142_v26 = vld [vmem:[%s2972_s1 + $0x244] ss:$16 sps:$4 sm:$0xff]   ;;  %v2144_v27 = vld [vmem:[%s2972_s1 + $0x24c] ss:$16 sps:$4 sm:$0xff]   ;;  %s2666_s24 = scalar_lea.vmem %s2442_s26, %s2512_s6 }
  0x20   : > { %s249_s21 = sadd.s32 16, %s2512_s6  ;;  %v2146_v28 = vld [vmem:[%s2972_s1 + $0x240] ss:$16 sps:$4 sm:$0xff]   ;;  %v2147_v29 = vld [vmem:[%s2972_s1 + $0x248] ss:$16 sps:$4 sm:$0xff]   ;;  %s1049_s25 = sadd.s32 32, %s2512_s6 }
  0x21   : > { %578 = vmatpush1.bf16.msra.mxu0 %v2122_v12  ;;  %631 = vmatpush1.bf16.msra.mxu1 %v2123_v13  ;;  %v2148_v30 = vld [vmem:[%s2972_s1 + $0x264] ss:$16 sps:$4 sm:$0xff]   ;;  %s250_s30 = sshra.s32 %s249_s21, 3  ;;  %v2150_v31 = vld [vmem:[%s2972_s1 + $0x26c] ss:$16 sps:$4 sm:$0xff]   ;;  %s1050_s6 = sshra.s32 %s1049_s25, 3 }
  0x22   : > { %579 = vmatprep.subr.bf16.mxu0 %v2124_v14  ;;  %632 = vmatprep.subr.bf16.mxu1 %v2126_v15  ;;  %v2152_v32 = vld [vmem:[%s2972_s1 + $0x260] ss:$16 sps:$4 sm:$0xff]   ;;  %s2061_s9 = sshll.u32 %s250_s30, 3  ;;  %v2153_v33 = vld [vmem:[%s2972_s1 + $0x268] ss:$16 sps:$4 sm:$0xff]   ;;  %s2062_s21 = sshll.u32 %s1050_s6, 3 }
  0x23   : > { %v2154_v34 = vld [vmem:[%s2972_s1 + $0x284] ss:$16 sps:$4 sm:$0xff]   ;;  %v2156_v35 = vld [vmem:[%s2972_s1 + $0x28c] ss:$16 sps:$4 sm:$0xff]   ;;  %s2552_s22 = scalar_lea.vmem %s2442_s26, %s2061_s9  ;;  %v2158_v36 = vld [vmem:[%s2972_s1 + $0x280] ss:$16 sps:$4 sm:$0xff]   ;;  %s2786_s7 = scalar_lea.vmem %s2442_s26, %s2062_s21 }
  0x24   : > { %v2159_v37 = vld [vmem:[%s2972_s1 + $0x288] ss:$16 sps:$4 sm:$0xff]   ;;  %v2160_v38 = vld [vmem:[%s2972_s1 + $0x2a4] ss:$16 sps:$4 sm:$0xff]   ;;  %v2162_v39 = vld [vmem:[%s2972_s1 + $0x2ac] ss:$16 sps:$4 sm:$0xff]  }
  0x25   : > { %580 = vmatpush1.bf16.msra.mxu0 %v2128_v16  ;;  %633 = vmatpush1.bf16.msra.mxu1 %v2129_v17  ;;  %v2180_v40 = vld [vmem:[%s2552_s22 + $0x4] ss:$8 sps:$4 sm:$0xff]   ;;  %v2164_v41 = vld [vmem:[%s2972_s1 + $0x2a0] ss:$16 sps:$4 sm:$0xff]   ;;  %v2165_v42 = vld [vmem:[%s2972_s1 + $0x2a8] ss:$16 sps:$4 sm:$0xff]  }
  0x26   : > { %581 = vmatprep.subr.bf16.mxu0 %v2130_v18  ;;  %634 = vmatprep.subr.bf16.mxu1 %v2132_v19  ;;  %v2166_v43 = vld [vmem:[%s2972_s1 + $0x2c4] ss:$16 sps:$4 sm:$0xff]   ;;  %v2168_v44 = vld [vmem:[%s2972_s1 + $0x2cc] ss:$16 sps:$4 sm:$0xff]   ;;  %v2170_v45 = vld [vmem:[%s2972_s1 + $0x2c0] ss:$16 sps:$4 sm:$0xff]  }
  0x27   : > { %1891 = vmatprep.mubr.msk.bf16.mxu0 %vm566_vm1, %v2180_v40  ;;  %1893 = vmatprep.mubr.msk.bf16.mxu1 %vm566_vm1, %v2180_v40  ;;  %v2171_v46 = vld [vmem:[%s2972_s1 + $0x2c8] ss:$16 sps:$4 sm:$0xff]   ;;  %v2172_v47 = vld [vmem:[%s2972_s1 + $0x2e4] ss:$16 sps:$4 sm:$0xff]   ;;  %v2174_v48 = vld [vmem:[%s2972_s1 + $0x2ec] ss:$16 sps:$4 sm:$0xff]  }
  0x28   : > { %v2176_v49 = vld [vmem:[%s2972_s1 + $0x2e0] ss:$16 sps:$4 sm:$0xff]   ;;  %v2177_v50 = vld [vmem:[%s2972_s1 + $0x2e8] ss:$16 sps:$4 sm:$0xff]   ;;  %v2183_v51 = vld [vmem:[%s2972_s1 + $0x4] ss:$16 sps:$4 sm:$0xff]  }
  0x29   : > { %582 = vmatpush1.bf16.msra.mxu0 %v2134_v20  ;;  %635 = vmatpush1.bf16.msra.mxu1 %v2135_v21  ;;  %v2186_v52 = vld [vmem:[%s2972_s1 + $0xc] ss:$16 sps:$4 sm:$0xff]   ;;  %v2178_v53 = vld [vmem:[%s2552_s22] ss:$8 sps:$4 sm:$0xff]   ;;  %v2189_v56 = vld [vmem:[%s2972_s1 + $0x24] ss:$16 sps:$4 sm:$0xff]  }
  0x2a   : > { %583 = vmatprep.subr.bf16.mxu0 %v2136_v22  ;;  %636 = vmatprep.subr.bf16.mxu1 %v2138_v23  ;;  %v2181_v54 = vld [vmem:[%s2972_s1] ss:$16 sps:$4 sm:$0xff]   ;;  %v2184_v55 = vld [vmem:[%s2972_s1 + $0x8] ss:$16 sps:$4 sm:$0xff]   ;;  %v2192_v57 = vld [vmem:[%s2972_s1 + $0x2c] ss:$16 sps:$4 sm:$0xff]  }
  0x2b   : > { %v2187_v58 = vld [vmem:[%s2972_s1 + $0x20] ss:$16 sps:$4 sm:$0xff]   ;;  %v2190_v59 = vld [vmem:[%s2972_s1 + $0x28] ss:$16 sps:$4 sm:$0xff]   ;;  %v2195_v60 = vld [vmem:[%s2972_s1 + $0x44] ss:$16 sps:$4 sm:$0xff]  }
  0x2c   : > { %v2198_v61 = vld [vmem:[%s2972_s1 + $0x4c] ss:$16 sps:$4 sm:$0xff]   ;;  %v2193_v62 = vld [vmem:[%s2972_s1 + $0x40] ss:$16 sps:$4 sm:$0xff]   ;;  %v2196_v63 = vld [vmem:[%s2972_s1 + $0x48] ss:$16 sps:$4 sm:$0xff]  }
  0x2d   : > { %584 = vmatpush1.bf16.msra.mxu0 %v2140_v24  ;;  %637 = vmatpush1.bf16.msra.mxu1 %v2141_v25  ;;  %v2201_v0 = vld [vmem:[%s2972_s1 + $0x64] ss:$16 sps:$4 sm:$0xff]   ;;  %v2204_v1 = vld [vmem:[%s2972_s1 + $0x6c] ss:$16 sps:$4 sm:$0xff]   ;;  %v2199_v2 = vld [vmem:[%s2972_s1 + $0x60] ss:$16 sps:$4 sm:$0xff]  }
  0x2e   : > { %585 = vmatprep.subr.bf16.mxu0 %v2142_v26  ;;  %638 = vmatprep.subr.bf16.mxu1 %v2144_v27  ;;  %v2202_v3 = vld [vmem:[%s2972_s1 + $0x68] ss:$16 sps:$4 sm:$0xff]   ;;  %v2207_v4 = vld [vmem:[%s2972_s1 + $0x84] ss:$16 sps:$4 sm:$0xff]   ;;  %v2210_v5 = vld [vmem:[%s2972_s1 + $0x8c] ss:$16 sps:$4 sm:$0xff]  }
  0x2f   : > { %v2241_v6 = vld [vmem:[%s2552_s22 + $0x14] ss:$8 sps:$4 sm:$0xff]   ;;  %v2243_v7 = vld [vmem:[%s2552_s22 + $0x10] ss:$8 sps:$4 sm:$0xff]   ;;  %v2258_v14 = vld [vmem:[%s2666_s24 + $0x4] ss:$8 sps:$4 sm:$0xff]  }
  0x30   : > { %v2205_v8 = vld [vmem:[%s2972_s1 + $0x80] ss:$16 sps:$4 sm:$0xff]   ;;  %v2208_v9 = vld [vmem:[%s2972_s1 + $0x88] ss:$16 sps:$4 sm:$0xff]   ;;  %v2213_v10 = vld [vmem:[%s2972_s1 + $0xa4] ss:$16 sps:$4 sm:$0xff]  }
  0x31   : > { %586 = vmatpush1.bf16.msra.mxu0 %v2146_v28  ;;  %639 = vmatpush1.bf16.msra.mxu1 %v2147_v29  ;;  %v2216_v11 = vld [vmem:[%s2972_s1 + $0xac] ss:$16 sps:$4 sm:$0xff]   ;;  %v2211_v12 = vld [vmem:[%s2972_s1 + $0xa0] ss:$16 sps:$4 sm:$0xff]   ;;  %v2214_v13 = vld [vmem:[%s2972_s1 + $0xa8] ss:$16 sps:$4 sm:$0xff]  }
  0x32   : > { %587 = vmatprep.subr.bf16.mxu0 %v2148_v30  ;;  %640 = vmatprep.subr.bf16.mxu1 %v2150_v31  ;;  %v2219_v15 = vld [vmem:[%s2972_s1 + $0xc4] ss:$16 sps:$4 sm:$0xff]   ;;  %v2222_v16 = vld [vmem:[%s2972_s1 + $0xcc] ss:$16 sps:$4 sm:$0xff]   ;;  %v2217_v17 = vld [vmem:[%s2972_s1 + $0xc0] ss:$16 sps:$4 sm:$0xff]  }
  0x33   : > { %v2220_v18 = vld [vmem:[%s2972_s1 + $0xc8] ss:$16 sps:$4 sm:$0xff]   ;;  %v2225_v19 = vld [vmem:[%s2972_s1 + $0xe4] ss:$16 sps:$4 sm:$0xff]   ;;  %v2228_v20 = vld [vmem:[%s2972_s1 + $0xec] ss:$16 sps:$4 sm:$0xff]  }
  0x34   : > { %v2223_v21 = vld [vmem:[%s2972_s1 + $0xe0] ss:$16 sps:$4 sm:$0xff]   ;;  %v2226_v22 = vld [vmem:[%s2972_s1 + $0xe8] ss:$16 sps:$4 sm:$0xff]   ;;  %v2231_v23 = vld [vmem:[%s2972_s1 + $0x104] ss:$16 sps:$4 sm:$0xff]  }
  0x35   : > { %588 = vmatpush1.bf16.msra.mxu0 %v2152_v32  ;;  %641 = vmatpush1.bf16.msra.mxu1 %v2153_v33  ;;  %v2234_v24 = vld [vmem:[%s2972_s1 + $0x10c] ss:$16 sps:$4 sm:$0xff]   ;;  %v2229_v25 = vld [vmem:[%s2972_s1 + $0x100] ss:$16 sps:$4 sm:$0xff]   ;;  %v2232_v26 = vld [vmem:[%s2972_s1 + $0x108] ss:$16 sps:$4 sm:$0xff]  }
  0x36   : > { %589 = vmatprep.subr.bf16.mxu0 %v2154_v34  ;;  %642 = vmatprep.subr.bf16.mxu1 %v2156_v35  ;;  %v2237_v27 = vld [vmem:[%s2972_s1 + $0x124] ss:$16 sps:$4 sm:$0xff]   ;;  %v2240_v28 = vld [vmem:[%s2972_s1 + $0x12c] ss:$16 sps:$4 sm:$0xff]   ;;  %v2235_v29 = vld [vmem:[%s2972_s1 + $0x120] ss:$16 sps:$4 sm:$0xff]  }
  0x37   : > { %v2238_v30 = vld [vmem:[%s2972_s1 + $0x128] ss:$16 sps:$4 sm:$0xff]   ;;  %v2246_v31 = vld [vmem:[%s2972_s1 + $0x144] ss:$16 sps:$4 sm:$0xff]   ;;  %v2249_v32 = vld [vmem:[%s2972_s1 + $0x14c] ss:$16 sps:$4 sm:$0xff]  }
  0x38   : > { %v2244_v33 = vld [vmem:[%s2972_s1 + $0x140] ss:$16 sps:$4 sm:$0xff]   ;;  %v2247_v34 = vld [vmem:[%s2972_s1 + $0x148] ss:$16 sps:$4 sm:$0xff]   ;;  %v2252_v35 = vld [vmem:[%s2972_s1 + $0x164] ss:$16 sps:$4 sm:$0xff]  }
  0x39   : > { %590 = vmatpush1.bf16.msra.mxu0 %v2158_v36  ;;  %643 = vmatpush1.bf16.msra.mxu1 %v2159_v37  ;;  %v2255_v36 = vld [vmem:[%s2972_s1 + $0x16c] ss:$16 sps:$4 sm:$0xff]   ;;  %v2250_v37 = vld [vmem:[%s2972_s1 + $0x160] ss:$16 sps:$4 sm:$0xff]   ;;  %p2057_p7 = scmp.ne.s32.totalorder %s2362_s12, 1 }
  0x3a   : > { %591 = vmatprep.subr.bf16.mxu0 %v2160_v38  ;;  %644 = vmatprep.subr.bf16.mxu1 %v2162_v39  ;;  %v2253_v38 = vld [vmem:[%s2972_s1 + $0x168] ss:$16 sps:$4 sm:$0xff]   ;;  %v2261_v39 = vld [vmem:[%s2972_s1 + $0x304] ss:$16 sps:$4 sm:$0xff]   ;;  %v2264_v40 = vld [vmem:[%s2972_s1 + $0x30c] ss:$16 sps:$4 sm:$0xff]  }
  0x3d   : > { %592 = vmatpush1.bf16.msra.mxu0 %v2164_v41  ;;  %645 = vmatpush1.bf16.msra.mxu1 %v2165_v42  ;;  %v2256_v41 = vld [vmem:[%s2666_s24] ss:$8 sps:$4 sm:$0xff]  }
  0x3e   : > { %593 = vmatprep.subr.bf16.mxu0 %v2166_v43  ;;  %646 = vmatprep.subr.bf16.mxu1 %v2168_v44  ;;  %v2259_v42 = vld [vmem:[%s2972_s1 + $0x300] ss:$16 sps:$4 sm:$0xff]   ;;  %v2262_v43 = vld [vmem:[%s2972_s1 + $0x308] ss:$16 sps:$4 sm:$0xff]   ;;  %v2267_v44 = vld [vmem:[%s2972_s1 + $0x324] ss:$16 sps:$4 sm:$0xff]  }
  0x41   : > { %594 = vmatpush1.bf16.msra.mxu0 %v2170_v45  ;;  %647 = vmatpush1.bf16.msra.mxu1 %v2171_v46  ;;  %v2270_v45 = vld [vmem:[%s2972_s1 + $0x32c] ss:$16 sps:$4 sm:$0xff]  }
  0x42   : > { %595 = vmatprep.subr.bf16.mxu0 %v2172_v47  ;;  %648 = vmatprep.subr.bf16.mxu1 %v2174_v48  ;;  %v2271_v46 = vld [vmem:[%s2666_s24 + $0x14] ss:$8 sps:$4 sm:$0xff]   ;;  %v2265_v47 = vld [vmem:[%s2972_s1 + $0x320] ss:$16 sps:$4 sm:$0xff]   ;;  %v2268_v48 = vld [vmem:[%s2972_s1 + $0x328] ss:$16 sps:$4 sm:$0xff]  }
  0x45   : > { %596 = vmatpush1.bf16.msra.mxu0 %v2176_v49  ;;  %649 = vmatpush1.bf16.msra.mxu1 %v2177_v50  ;;  %v2276_v49 = vld [vmem:[%s2972_s1 + $0x344] ss:$16 sps:$4 sm:$0xff]   ;;  %v2279_v50 = vld [vmem:[%s2972_s1 + $0x34c] ss:$16 sps:$4 sm:$0xff]  }
  0x46   : > { %943 = vmatprep.subr.bf16.mxu0 %v2183_v51  ;;  %996 = vmatprep.subr.bf16.mxu1 %v2186_v52  ;;  %v2273_v51 = vld [vmem:[%s2666_s24 + $0x10] ss:$8 sps:$4 sm:$0xff]  }
  0x47   : > { %v2274_v52 = vld [vmem:[%s2972_s1 + $0x340] ss:$16 sps:$4 sm:$0xff]  }
  0x48   : > { %606 = vmatmul.mubr.bf16.vlgmr.msra.gmra.mrb[0].mxu0 %v2178_v53  ;;  %659 = vmatmul.mubr.bf16.vlgmr.msra.gmra.mrb[0].mxu1 %v2178_v53  ;;  %v2277_v53 = vld [vmem:[%s2972_s1 + $0x348] ss:$16 sps:$4 sm:$0xff]  }
  0x49   : > { %944 = vmatpush1.bf16.msra.mxu0 %v2181_v54  ;;  %997 = vmatpush1.bf16.msra.mxu1 %v2184_v55  ;;  %v2282_v54 = vld [vmem:[%s2972_s1 + $0x364] ss:$16 sps:$4 sm:$0xff]   ;;  %v2285_v55 = vld [vmem:[%s2972_s1 + $0x36c] ss:$16 sps:$4 sm:$0xff]  }
  0x4a   : > { %945 = vmatprep.subr.bf16.mxu0 %v2189_v56  ;;  %998 = vmatprep.subr.bf16.mxu1 %v2192_v57  ;;  %v2336_v56 = vld [vmem:[%s2786_s7 + $0x4] ss:$8 sps:$4 sm:$0xff]   ;;  %v2280_v57 = vld [vmem:[%s2972_s1 + $0x360] ss:$16 sps:$4 sm:$0xff]  }
  0x4b   : > { %1892 = vmatprep.mubr.msk.bf16.mxu0 %vm566_vm1, %v2241_v6  ;;  %1894 = vmatprep.mubr.msk.bf16.mxu1 %vm566_vm1, %v2241_v6  ;;  %v2301_v6 = vld [vmem:[%s2972_s1 + $0x3c8] ss:$16 sps:$4 sm:$0xff]  }
  0x4d   : > { %946 = vmatpush1.bf16.msra.mxu0 %v2187_v58  ;;  %999 = vmatpush1.bf16.msra.mxu1 %v2190_v59  ;;  %v2283_v58 = vld [vmem:[%s2972_s1 + $0x368] ss:$16 sps:$4 sm:$0xff]   ;;  %v2288_v59 = vld [vmem:[%s2972_s1 + $0x384] ss:$16 sps:$4 sm:$0xff]  }
  0x4e   : > { %947 = vmatprep.subr.bf16.mxu0 %v2195_v60  ;;  %1000 = vmatprep.subr.bf16.mxu1 %v2198_v61  ;;  %v2291_v60 = vld [vmem:[%s2972_s1 + $0x38c] ss:$16 sps:$4 sm:$0xff]   ;;  %v2286_v61 = vld [vmem:[%s2972_s1 + $0x380] ss:$16 sps:$4 sm:$0xff]  }
  0x50   : > { %616 = vmatmul.mubr.bf16.gmra.mrb[4].mxu0 %v2243_v7  ;;  %669 = vmatmul.mubr.bf16.gmra.mrb[4].mxu1 %v2243_v7  ;;  %v2306_v7 = vld [vmem:[%s2972_s1 + $0x3e4] ss:$16 sps:$4 sm:$0xff]  }
  0x51   : > { %948 = vmatpush1.bf16.msra.mxu0 %v2193_v62  ;;  %1001 = vmatpush1.bf16.msra.mxu1 %v2196_v63  ;;  %v2289_v62 = vld [vmem:[%s2972_s1 + $0x388] ss:$16 sps:$4 sm:$0xff]   ;;  %v2294_v63 = vld [vmem:[%s2972_s1 + $0x3a4] ss:$16 sps:$4 sm:$0xff]  }
  0x52   : > { %949 = vmatprep.subr.bf16.mxu0 %v2201_v0  ;;  %1002 = vmatprep.subr.bf16.mxu1 %v2204_v1  ;;  %v2297_v0 = vld [vmem:[%s2972_s1 + $0x3ac] ss:$16 sps:$4 sm:$0xff]   ;;  %v2292_v1 = vld [vmem:[%s2972_s1 + $0x3a0] ss:$16 sps:$4 sm:$0xff]  }
  0x53   : > { %1947 = vmatprep.mubr.msk.bf16.mxu0 %vm566_vm1, %v2258_v14  ;;  %1949 = vmatprep.mubr.msk.bf16.mxu1 %vm566_vm1, %v2258_v14  ;;  %v2313_v14 = vld [vmem:[%s2972_s1 + $0x408] ss:$16 sps:$4 sm:$0xff]  }
  0x55   : > { %950 = vmatpush1.bf16.msra.mxu0 %v2199_v2  ;;  %1003 = vmatpush1.bf16.msra.mxu1 %v2202_v3  ;;  %v2295_v2 = vld [vmem:[%s2972_s1 + $0x3a8] ss:$16 sps:$4 sm:$0xff]   ;;  %v2300_v3 = vld [vmem:[%s2972_s1 + $0x3c4] ss:$16 sps:$4 sm:$0xff]  }
  0x56   : > { %951 = vmatprep.subr.bf16.mxu0 %v2207_v4  ;;  %1004 = vmatprep.subr.bf16.mxu1 %v2210_v5  ;;  %v2303_v4 = vld [vmem:[%s2972_s1 + $0x3cc] ss:$16 sps:$4 sm:$0xff]   ;;  %v2298_v5 = vld [vmem:[%s2972_s1 + $0x3c0] ss:$16 sps:$4 sm:$0xff]  }
  0x59   : > { %952 = vmatpush1.bf16.msra.mxu0 %v2205_v8  ;;  %1005 = vmatpush1.bf16.msra.mxu1 %v2208_v9  ;;  %v2309_v8 = vld [vmem:[%s2972_s1 + $0x3ec] ss:$16 sps:$4 sm:$0xff]   ;;  %v2304_v9 = vld [vmem:[%s2972_s1 + $0x3e0] ss:$16 sps:$4 sm:$0xff]  }
  0x5a   : > { %953 = vmatprep.subr.bf16.mxu0 %v2213_v10  ;;  %1006 = vmatprep.subr.bf16.mxu1 %v2216_v11  ;;  %v2307_v10 = vld [vmem:[%s2972_s1 + $0x3e8] ss:$16 sps:$4 sm:$0xff]   ;;  %v2312_v11 = vld [vmem:[%s2972_s1 + $0x404] ss:$16 sps:$4 sm:$0xff]  }
  0x5d   : > { %954 = vmatpush1.bf16.msra.mxu0 %v2211_v12  ;;  %1007 = vmatpush1.bf16.msra.mxu1 %v2214_v13  ;;  %v2315_v12 = vld [vmem:[%s2972_s1 + $0x40c] ss:$16 sps:$4 sm:$0xff]   ;;  %v2310_v13 = vld [vmem:[%s2972_s1 + $0x400] ss:$16 sps:$4 sm:$0xff]  }
  0x5e   : > { %955 = vmatprep.subr.bf16.mxu0 %v2219_v15  ;;  %1008 = vmatprep.subr.bf16.mxu1 %v2222_v16  ;;  %v2318_v15 = vld [vmem:[%s2972_s1 + $0x424] ss:$16 sps:$4 sm:$0xff]   ;;  %v2321_v16 = vld [vmem:[%s2972_s1 + $0x42c] ss:$16 sps:$4 sm:$0xff]  }
  0x61   : > { %956 = vmatpush1.bf16.msra.mxu0 %v2217_v17  ;;  %1009 = vmatpush1.bf16.msra.mxu1 %v2220_v18  ;;  %v2316_v17 = vld [vmem:[%s2972_s1 + $0x420] ss:$16 sps:$4 sm:$0xff]   ;;  %v2319_v18 = vld [vmem:[%s2972_s1 + $0x428] ss:$16 sps:$4 sm:$0xff]  }
  0x62   : > { %957 = vmatprep.subr.bf16.mxu0 %v2225_v19  ;;  %1010 = vmatprep.subr.bf16.mxu1 %v2228_v20  ;;  %v2324_v19 = vld [vmem:[%s2972_s1 + $0x444] ss:$16 sps:$4 sm:$0xff]   ;;  %v2327_v20 = vld [vmem:[%s2972_s1 + $0x44c] ss:$16 sps:$4 sm:$0xff]  }
  0x65   : > { %958 = vmatpush1.bf16.msra.mxu0 %v2223_v21  ;;  %1011 = vmatpush1.bf16.msra.mxu1 %v2226_v22  ;;  %v2322_v21 = vld [vmem:[%s2972_s1 + $0x440] ss:$16 sps:$4 sm:$0xff]   ;;  %v2325_v22 = vld [vmem:[%s2972_s1 + $0x448] ss:$16 sps:$4 sm:$0xff]  }
  0x66   : > { %959 = vmatprep.subr.bf16.mxu0 %v2231_v23  ;;  %1012 = vmatprep.subr.bf16.mxu1 %v2234_v24  ;;  %v2330_v23 = vld [vmem:[%s2972_s1 + $0x464] ss:$16 sps:$4 sm:$0xff]   ;;  %v2333_v24 = vld [vmem:[%s2972_s1 + $0x46c] ss:$16 sps:$4 sm:$0xff]  }
  0x69   : > { %960 = vmatpush1.bf16.msra.mxu0 %v2229_v25  ;;  %1013 = vmatpush1.bf16.msra.mxu1 %v2232_v26  ;;  %v2328_v25 = vld [vmem:[%s2972_s1 + $0x460] ss:$16 sps:$4 sm:$0xff]   ;;  %v2331_v26 = vld [vmem:[%s2972_s1 + $0x468] ss:$16 sps:$4 sm:$0xff]  }
  0x6a   : > { %961 = vmatprep.subr.bf16.mxu0 %v2237_v27  ;;  %1014 = vmatprep.subr.bf16.mxu1 %v2240_v28  ;;  %v2334_v27 = vld [vmem:[%s2786_s7] ss:$8 sps:$4 sm:$0xff]   ;;  %v2337_v28 = vld [vmem:[%s2786_s7 + $0x14] ss:$8 sps:$4 sm:$0xff]  }
  0x6d   : > { %962 = vmatpush1.bf16.msra.mxu0 %v2235_v29  ;;  %1015 = vmatpush1.bf16.msra.mxu1 %v2238_v30  ;;  %v2339_v29 = vld [vmem:[%s2786_s7 + $0x10] ss:$8 sps:$4 sm:$0xff]  }
  0x6e   : > { %963 = vmatprep.subr.bf16.mxu0 %v2246_v31  ;;  %1016 = vmatprep.subr.bf16.mxu1 %v2249_v32 }
  0x71   : > { %964 = vmatpush1.bf16.msra.mxu0 %v2244_v33  ;;  %1017 = vmatpush1.bf16.msra.mxu1 %v2247_v34 }
  0x72   : > { %965 = vmatprep.subr.bf16.mxu0 %v2252_v35  ;;  %1018 = vmatprep.subr.bf16.mxu1 %v2255_v36 }
  0x75   : > { %966 = vmatpush1.bf16.msra.mxu0 %v2250_v37  ;;  %1019 = vmatpush1.bf16.msra.mxu1 %v2253_v38 }
  0x76   : > { %1372 = vmatprep.subr.bf16.mxu0 %v2261_v39  ;;  %1425 = vmatprep.subr.bf16.mxu1 %v2264_v40 }
  0x78   : > { %976 = vmatmul.mubr.bf16.vlgmr.msra.gmra.mrb[8].mxu0 %v2256_v41  ;;  %1029 = vmatmul.mubr.bf16.vlgmr.msra.gmra.mrb[8].mxu1 %v2256_v41 }
  0x79   : > { %1373 = vmatpush1.bf16.msra.mxu0 %v2259_v42  ;;  %1426 = vmatpush1.bf16.msra.mxu1 %v2262_v43 }
  0x7a   : > { %1374 = vmatprep.subr.bf16.mxu0 %v2267_v44  ;;  %1427 = vmatprep.subr.bf16.mxu1 %v2270_v45 }
  0x7b   : > { %1948 = vmatprep.mubr.msk.bf16.mxu0 %vm566_vm1, %v2271_v46  ;;  %1950 = vmatprep.mubr.msk.bf16.mxu1 %vm566_vm1, %v2271_v46 }
  0x7d   : > { %1375 = vmatpush1.bf16.msra.mxu0 %v2265_v47  ;;  %1428 = vmatpush1.bf16.msra.mxu1 %v2268_v48 }
  0x7e   : > { %1376 = vmatprep.subr.bf16.mxu0 %v2276_v49  ;;  %1429 = vmatprep.subr.bf16.mxu1 %v2279_v50 }
  0x80   : > { %986 = vmatmul.mubr.bf16.gmra.mrb[12].mxu0 %v2273_v51  ;;  %1039 = vmatmul.mubr.bf16.gmra.mrb[12].mxu1 %v2273_v51 }
  0x81   : > { %1377 = vmatpush1.bf16.msra.mxu0 %v2274_v52  ;;  %1430 = vmatpush1.bf16.msra.mxu1 %v2277_v53 }
  0x82   : > { %1378 = vmatprep.subr.bf16.mxu0 %v2282_v54  ;;  %1431 = vmatprep.subr.bf16.mxu1 %v2285_v55 }
  0x83   : > { %2053 = vmatprep.mubr.msk.bf16.mxu0 %vm566_vm1, %v2336_v56  ;;  %2055 = vmatprep.mubr.msk.bf16.mxu1 %vm566_vm1, %v2336_v56 }
  0x85   : > { %1379 = vmatpush1.bf16.msra.mxu0 %v2280_v57  ;;  %1432 = vmatpush1.bf16.msra.mxu1 %v2283_v58 }
  0x86   : > { %1380 = vmatprep.subr.bf16.mxu0 %v2288_v59  ;;  %1433 = vmatprep.subr.bf16.mxu1 %v2291_v60 }
  0x89   : > { %1381 = vmatpush1.bf16.msra.mxu0 %v2286_v61  ;;  %1434 = vmatpush1.bf16.msra.mxu1 %v2289_v62 }
  0x8a   : > { %1382 = vmatprep.subr.bf16.mxu0 %v2294_v63  ;;  %1435 = vmatprep.subr.bf16.mxu1 %v2297_v0 }
  0x8d   : > { %1383 = vmatpush1.bf16.msra.mxu0 %v2292_v1  ;;  %1436 = vmatpush1.bf16.msra.mxu1 %v2295_v2 }
  0x8e   : > { %1384 = vmatprep.subr.bf16.mxu0 %v2300_v3  ;;  %1437 = vmatprep.subr.bf16.mxu1 %v2303_v4 }
  0x91   : > { %1385 = vmatpush1.bf16.msra.mxu0 %v2298_v5  ;;  %1438 = vmatpush1.bf16.msra.mxu1 %v2301_v6  ;;  %v1496_v6 = vlaneseq }
  0x92   : > { %1386 = vmatprep.subr.bf16.mxu0 %v2306_v7  ;;  %1439 = vmatprep.subr.bf16.mxu1 %v2309_v8 }
  0x93   : > { %v2917_v7 = vshrl.u32 %v1496_v6, 7  ;;  %vm1698_vm4 = vcmp.lt.s32.totalorder %v1496_v6, 512 }
  0x95   : > { %1387 = vmatpush1.bf16.msra.mxu0 %v2304_v9  ;;  %1440 = vmatpush1.bf16.msra.mxu1 %v2307_v10  ;;  %v1498_v8 = vsub.s32 0, %v2917_v7  ;;  %v1506_v9 = vsub.s32 2, %v2917_v7  ;;  %v1494_v10 = vld [vmem:[%s2973_s2] sm:$0xf] }
  0x96   : > { %1388 = vmatprep.subr.bf16.mxu0 %v2312_v11  ;;  %1441 = vmatprep.subr.bf16.mxu1 %v2315_v12  ;;  %v1502_v11 = vsub.s32 1, %v2917_v7  ;;  %v1510_v12 = vsub.s32 3, %v2917_v7 }
  0x99   : > { %1389 = vmatpush1.bf16.msra.mxu0 %v2310_v13  ;;  %1442 = vmatpush1.bf16.msra.mxu1 %v2313_v14 }
  0x9a   : > { %1390 = vmatprep.subr.bf16.mxu0 %v2318_v15  ;;  %1443 = vmatprep.subr.bf16.mxu1 %v2321_v16 }
  0x9d   : > { %1391 = vmatpush1.bf16.msra.mxu0 %v2316_v17  ;;  %1444 = vmatpush1.bf16.msra.mxu1 %v2319_v18 }
  0x9e   : > { %1392 = vmatprep.subr.bf16.mxu0 %v2324_v19  ;;  %1445 = vmatprep.subr.bf16.mxu1 %v2327_v20  ;;  %v1499_v19 = vrot.slane %v1494_v10, %v1498_v8  ;;  %v1507_v20 = vrot.slane %v1494_v10, %v1506_v9 }
  0xa1   : > { %1393 = vmatpush1.bf16.msra.mxu0 %v2322_v21  ;;  %1446 = vmatpush1.bf16.msra.mxu1 %v2325_v22 }
  0xa2   : > { %1394 = vmatprep.subr.bf16.mxu0 %v2330_v23  ;;  %1447 = vmatprep.subr.bf16.mxu1 %v2333_v24 }
  0xa5   : > { %1395 = vmatpush1.bf16.msra.mxu0 %v2328_v25  ;;  %1448 = vmatpush1.bf16.msra.mxu1 %v2331_v26  ;;  %v1503_v25 = vrot.slane %v1494_v10, %v1502_v11  ;;  %v1511_v26 = vrot.slane %v1494_v10, %v1510_v12 }
  0xa8   : > { %1405 = vmatmul.mubr.bf16.vlgmr.msra.gmra.mrb[16].mxu0 %v2334_v27  ;;  %1458 = vmatmul.mubr.bf16.vlgmr.msra.gmra.mrb[16].mxu1 %v2334_v27 }
  0xa9   : > { %2054 = vmatprep.mubr.msk.bf16.mxu0 %vm566_vm1, %v2337_v28  ;;  %2056 = vmatprep.mubr.msk.bf16.mxu1 %vm566_vm1, %v2337_v28 }
  0xb0   : > { %1415 = vmatmul.mubr.bf16.gmra.mrb[20].mxu0 %v2339_v29  ;;  %1468 = vmatmul.mubr.bf16.gmra.mrb[20].mxu1 %v2339_v29  ;;  %v1551_v29 = vadd.s32 16, %v2917_v7 }
 0x11b   : > { %v607_v30 = vpop.f32.mrb[0].mxu0  ;;  %v660_v31 = vpop.f32.mrb[0].mxu1 }
 0x11c   : > { %v609_v32 = vpop.f32.mrb[1].mxu0  ;;  %v662_v33 = vpop.f32.mrb[1].mxu1 }
 0x11d   : > { %v611_v34 = vpop.f32.mrb[2].mxu0  ;;  %v664_v35 = vpop.f32.mrb[2].mxu1 }
 0x11e   : > { %v613_v36 = vpop.f32.mrb[3].mxu0  ;;  %v666_v37 = vpop.f32.mrb[3].mxu1 }
 0x11f   : > { %v1571_v36 = vand.u32 15, %v1551_v29 }
 0x121   : > { %vm2932_vm3 = vcmp.lt.s32.totalorder %v1571_v36, 4 }
 0x123   : > { %v617_v38 = vpop.f32.mrb[4].mxu0  ;;  %v670_v39 = vpop.f32.mrb[4].mxu1 }
 0x124   : > { %v619_v40 = vpop.f32.mrb[5].mxu0  ;;  %v672_v41 = vpop.f32.mrb[5].mxu1 }
 0x125   : > { %v621_v42 = vpop.f32.mrb[6].mxu0  ;;  %v674_v43 = vpop.f32.mrb[6].mxu1 }
 0x126   : > { %v623_v44 = vpop.f32.mrb[7].mxu0  ;;  %v676_v45 = vpop.f32.mrb[7].mxu1 }
 0x14b   : > { %v977_v46 = vpop.f32.mrb[8].mxu0  ;;  %v1030_v47 = vpop.f32.mrb[8].mxu1 }
 0x14c   : > { %v978_v48 = vadd.f32 %v977_v46, %v607_v30  ;;  %v1031_v49 = vadd.f32 %v1030_v47, %v660_v31  ;;  %v979_v50 = vpop.f32.mrb[9].mxu0  ;;  %v1032_v51 = vpop.f32.mrb[9].mxu1  ;;  %v1557_v30 = vand.u32 15, %v2917_v7 }
 0x14d   : > { %v980_v52 = vadd.f32 %v979_v50, %v609_v32  ;;  %v1033_v53 = vadd.f32 %v1032_v51, %v662_v33  ;;  %v981_v54 = vpop.f32.mrb[10].mxu0  ;;  %v1034_v55 = vpop.f32.mrb[10].mxu1 }
 0x14e   : > { %v983_v56 = vpop.f32.mrb[11].mxu0  ;;  %v1036_v57 = vpop.f32.mrb[11].mxu1  ;;  %vm2928_vm2 = vcmp.lt.s32.totalorder %v1557_v30, 4 }
 0x153   : > { %v987_v58 = vpop.f32.mrb[12].mxu0  ;;  %v1040_v59 = vpop.f32.mrb[12].mxu1 }
 0x154   : > { %v988_v60 = vadd.f32 %v987_v58, %v617_v38  ;;  %v1041_v61 = vadd.f32 %v1040_v59, %v670_v39  ;;  %v989_v62 = vpop.f32.mrb[13].mxu0  ;;  %v1042_v63 = vpop.f32.mrb[13].mxu1 }
 0x155   : > { %v990_v0 = vadd.f32 %v989_v62, %v619_v40  ;;  %v1043_v1 = vadd.f32 %v1042_v63, %v672_v41  ;;  %v991_v2 = vpop.f32.mrb[14].mxu0  ;;  %v1044_v3 = vpop.f32.mrb[14].mxu1 }
 0x156   : > { %v993_v4 = vpop.f32.mrb[15].mxu0  ;;  %v1046_v5 = vpop.f32.mrb[15].mxu1 }
 0x17b   : > { %v1406_v13 = vpop.f32.mrb[16].mxu0  ;;  %v1459_v14 = vpop.f32.mrb[16].mxu1 }
 0x17c   : > { %v1478_v15 = vadd.f32 %v1406_v13, %v978_v48  ;;  %v1480_v16 = vadd.f32 %v1459_v14, %v1031_v49  ;;  %v1408_v17 = vpop.f32.mrb[17].mxu0  ;;  %v1461_v18 = vpop.f32.mrb[17].mxu1 }
 0x17d   : > { %v1479_v21 = vadd.f32 %v1408_v17, %v980_v52  ;;  %v1481_v22 = vadd.f32 %v1461_v18, %v1033_v53  ;;  %v1410_v23 = vpop.f32.mrb[18].mxu0  ;;  %v1463_v24 = vpop.f32.mrb[18].mxu1 }
 0x17e   : > { %v1412_v27 = vpop.f32.mrb[19].mxu0  ;;  %v1465_v28 = vpop.f32.mrb[19].mxu1  ;;  %v1516_v31 = vadd.f32 %v1499_v19, %v1478_v15  ;;  %v1518_v32 = vadd.f32 %v1507_v20, %v1480_v16 }
 0x17f   : > { %v1517_v33 = vadd.f32 %v1503_v25, %v1479_v21  ;;  %v1519_v34 = vadd.f32 %v1511_v26, %v1481_v22 }
 0x180   : > { %v1532_v43 = vmax.f32 %v1516_v31, 0.0  ;;  %v1534_v44 = vmax.f32 %v1518_v32, 0.0 }
 0x181   : > { %v1533_v49 = vmax.f32 %v1517_v33, 0.0  ;;  %v1535_v50 = vmax.f32 %v1519_v34, 0.0 }
 0x183   : > { %v1416_v35 = vpop.f32.mrb[20].mxu0  ;;  %v1469_v37 = vpop.f32.mrb[20].mxu1 }
 0x184   : > { %v1486_v39 = vadd.f32 %v1416_v35, %v988_v60  ;;  %v1488_v40 = vadd.f32 %v1469_v37, %v1041_v61  ;;  %v1418_v41 = vpop.f32.mrb[21].mxu0  ;;  %v1471_v42 = vpop.f32.mrb[21].mxu1  ;;  %v1613_v60 = vsel %vm2928_vm2, %v1532_v43, 0.0  ;;  %v1615_v61 = vsel %vm2928_vm2, %v1534_v44, 0.0 }
 0x185   : > { %v1487_v45 = vadd.f32 %v1418_v41, %v990_v0  ;;  %v1489_v46 = vadd.f32 %v1471_v42, %v1043_v1  ;;  %v1420_v47 = vpop.f32.mrb[22].mxu0  ;;  %v1473_v48 = vpop.f32.mrb[22].mxu1  ;;  %v1614_v0 = vsel %vm2928_vm2, %v1533_v49, 0.0  ;;  %v1616_v1 = vsel %vm2928_vm2, %v1535_v50, 0.0 }
 0x186   : > { %v1524_v51 = vadd.f32 %v1499_v19, %v1486_v39  ;;  %v1526_v52 = vadd.f32 %v1507_v20, %v1488_v40  ;;  %v1422_v53 = vpop.f32.mrb[23].mxu0  ;;  %v1475_v54 = vpop.f32.mrb[23].mxu1  ;;  %v2381_v19 = vmov 1966171168  }
 0x187   : > { %v1525_v56 = vadd.f32 %v1503_v25, %v1487_v45  ;;  %v1527_v57 = vadd.f32 %v1511_v26, %v1489_v46  ;;  %v1673_v20 = vunpack.c.l.s4 %v2381_v19  ;;  %v1629_v45 = vld [vmem:[#allocation2] sm:$0xf] }
 0x188   : > { %v1540_v58 = vmax.f32 %v1524_v51, 0.0  ;;  %v1542_v59 = vmax.f32 %v1526_v52, 0.0 }
 0x189   : > { %v1541_v62 = vmax.f32 %v1525_v56, 0.0  ;;  %v1543_v63 = vmax.f32 %v1527_v57, 0.0  ;;  %v1674_v29 = vunpack.c.0.s8 %v1673_v20 }
 0x18a   : > { %v1621_v2 = vsel %vm2932_vm3, %v1540_v58, 0.0  ;;  %v1623_v3 = vsel %vm2932_vm3, %v1542_v59, 0.0 }
 0x18b   : > { %v1631_v4 = vadd.f32 %v1621_v2, %v1613_v60  ;;  %v1649_v5 = vadd.f32 %v1623_v3, %v1615_v61  ;;  %v1622_v8 = vsel %vm2932_vm3, %v1541_v62, 0.0  ;;  %v1624_v9 = vsel %vm2932_vm3, %v1543_v63, 0.0 }
 0x18c   : > { %v1640_v10 = vadd.f32 %v1622_v8, %v1614_v0  ;;  %v1658_v11 = vadd.f32 %v1624_v9, %v1616_v1  ;;  %v1677_v38 = vsub.s32 %v1674_v29, %v2917_v7 }
 0x18d   : > { %v1633_v12 = vrot.slane %v1631_v4, 4  ;;  %v1651_v13 = vrot.slane %v1649_v5, 4 }
 0x18e   : > { %v1642_v14 = vrot.slane %v1640_v10, 4  ;;  %v1660_v15 = vrot.slane %v1658_v11, 4 }
 0x18f   : > { %v1634_v16 = vadd.f32 %v1633_v12, %v1631_v4  ;;  %v1652_v17 = vadd.f32 %v1651_v13, %v1649_v5 }
 0x190   : > { %v1643_v18 = vadd.f32 %v1642_v14, %v1640_v10  ;;  %v1661_v21 = vadd.f32 %v1660_v15, %v1658_v11 }
 0x191   : > { %v1635_v22 = vrot.slane %v1634_v16, 2  ;;  %v1653_v23 = vrot.slane %v1652_v17, 2 }
 0x192   : > { %v1644_v24 = vrot.slane %v1643_v18, 2  ;;  %v1662_v25 = vrot.slane %v1661_v21, 2 }
 0x193   : > { %v1636_v26 = vadd.f32 %v1635_v22, %v1634_v16  ;;  %v1654_v27 = vadd.f32 %v1653_v23, %v1652_v17 }
 0x194   : > { %v1645_v28 = vadd.f32 %v1644_v24, %v1643_v18  ;;  %v1663_v30 = vadd.f32 %v1662_v25, %v1661_v21 }
 0x195   : > { %v1637_v31 = vrot.slane %v1636_v26, 1  ;;  %v1655_v32 = vrot.slane %v1654_v27, 1 }
 0x196   : > { %v1646_v33 = vrot.slane %v1645_v28, 1  ;;  %v1664_v34 = vrot.slane %v1663_v30, 1 }
 0x197   : > { %v1638_v35 = vadd.f32 %v1637_v31, %v1636_v26  ;;  %v1656_v36 = vadd.f32 %v1655_v32, %v1654_v27 }
 0x198   : > { %v1647_v37 = vadd.f32 %v1646_v33, %v1645_v28  ;;  %v1665_v39 = vadd.f32 %v1664_v34, %v1663_v30 }
 0x19a   : > { %v1670_v40 = vcombine.low %v1638_v35, %v1647_v37  ;;  %v1671_v41 = vcombine.low %v1656_v36, %v1665_v39 }
 0x19c   : > { %v1678_v42 = vrot.slane %v1670_v40, %v1677_v38  ;;  %v1685_v43 = vrot.slane %v1671_v41, %v1677_v38 }
 0x19e   : > { %v1686_v44 = vcombine.low %v1678_v42, %v1685_v43  ;;  %1704 = sbr.rel (%p2057_p7) target bundleno = 431 (0x1af), region = 40 }
 0x1a0   : > { %v1693_v46 = vrot.slane %v1686_v44, %v1677_v38 }
 0x1a2   : > { %v1695_v47 = vadd.f32 %v1693_v46, %v1629_v45 }
 0x1a4   : > { %1700 = vst.msk [vmem:[#allocation2] sm:$0xf] %vm1698_vm4, %v1695_v47 }
 0x1ab   : > { %v1705_v48 = vld [vmem:[#allocation2] sm:$0xf] }
 0x1ac   : > { %v1706_v49 = vmul.f32 0.0625, %v1705_v48 }
 0x1ae   : > { %1707 = vst.msk [vmem:[%s2437_s23] sm:$0xf] %vm1698_vm4, %v1706_v49 }
 0x1af PF: > { %s13_s16 = sadd.s32 1, %s2378_s16   ;;  %s2979_s12 = smov %s2370_s14 }
 0x1b0   : > { %p10_p8 = scmp.ge.s32.totalorder %s13_s16, 6   ;;  %s2980_s13 = smov %s2374_s15 }
 0x1b1   : > { %s2981_s14 = smov %s2984_s17  ;;  %s2982_s15 = smov %s2988_s18 }
 0x1b2   :  { %12 = sbr.rel (!%p10_p8) target bundleno = 3 (0x3), region = 75 }

</bundles_post_ra>
